<compile_context>
chip_gen: v7x
topology: tpu7x:2x2x1
jax: 0.10.0
libtpu: 0.0.40
codegen_flags: <defaults>
</compile_context>

<pallas_src>
import math
import functools

import jax
import jax.numpy as jnp
from jax import lax
from jax.experimental import pallas as pl
from jax.experimental.pallas import tpu as pltpu


# ---------------------------------------------------------------------------
# In-kernel helpers
# ---------------------------------------------------------------------------
def _layer_norm(x, w, b, eps=1e-5):
    # x: (N, D), w/b: (1, D). Matches torch.nn.LayerNorm (biased variance).
    mean = jnp.mean(x, axis=-1, keepdims=True)
    var = jnp.mean((x - mean) ** 2, axis=-1, keepdims=True)
    return (x - mean) * lax.rsqrt(var + eps) * w + b


# ---------------------------------------------------------------------------
# The Pallas kernel: whole transformer stack on one VMEM-resident block.
# Activation layout: (N, D) float32, row = b*S + s (batch-major).
# ---------------------------------------------------------------------------
def transformer_kernel(S, B, D, H, L,
                       x_ref, wqkv_ref, bqkv_ref, wo_ref, vecd_ref,
                       w1_ref, b1_ref, w2_ref, decw_ref, decb_ref,
                       out_ref):
    Dh = D // H
    N = S * B

    x = x_ref[...]                                       # (N, D), batch-major rows

    # causal additive mask (large finite negative, robust vs NaN), shared by
    # every (batch, head) block
    row = lax.broadcasted_iota(jnp.int32, (S, S), 0)
    col = lax.broadcasted_iota(jnp.int32, (S, S), 1)
    mask = jnp.where(col <= row, 0.0, -1e30).astype(jnp.float32)

    for l in range(L):                                   # small static L -> unrolled
        vd = vecd_ref[l]                                 # (8, D) packed per-layer vectors
        bo, ln1w, ln1b = vd[0:1, :], vd[1:2, :], vd[2:3, :]
        ln2w, ln2b, b2 = vd[3:4, :], vd[4:5, :], vd[5:6, :]

        # ---------------- multi-head self-attention ----------------
        # Fused lane-dense QKV projection (3D padded to 128 output lanes);
        # 1/sqrt(Dh) already folded into the q columns / bias at prep time.
        qkv = (jnp.dot(x, wqkv_ref[l], preferred_element_type=jnp.float32)
               + bqkv_ref[l])                            # (N, 128)
        q = qkv[:, 0 * D:1 * D]
        k = qkv[:, 1 * D:2 * D]
        v = qkv[:, 2 * D:3 * D]

        # Unrolled 2-D attention per (batch, head): contiguous static slices
        # (rows b*S:(b+1)*S, cols h*Dh:(h+1)*Dh), no 3-D reshapes/relayouts.
        batch_rows = []
        for b in range(B):
            r0, r1 = b * S, (b + 1) * S
            head_cols = []
            for h in range(H):
                c0, c1 = h * Dh, (h + 1) * Dh
                qg = q[r0:r1, c0:c1]                     # (S, Dh)
                kg = k[r0:r1, c0:c1]
                vg = v[r0:r1, c0:c1]
                scores = lax.dot_general(                # q @ k^T : (S, S)
                    qg, kg, (((1,), (1,)), ((), ())),
                    preferred_element_type=jnp.float32) + mask
                m = jnp.max(scores, axis=-1, keepdims=True)
                p = jnp.exp(scores - m)
                p = p / jnp.sum(p, axis=-1, keepdims=True)   # exact softmax
                head_cols.append(
                    jnp.dot(p, vg, preferred_element_type=jnp.float32))
            batch_rows.append(jnp.concatenate(head_cols, axis=1))   # (S, D)
        attn = jnp.concatenate(batch_rows, axis=0)                  # (N, D)
        attn = jnp.dot(attn, wo_ref[l],
                       preferred_element_type=jnp.float32) + bo

        x = _layer_norm(x + attn, ln1w, ln1b)            # post-norm

        # ---------------- feed-forward network ----------------
        # hidden dim padded to Fp; zero pad cols of w1 / rows of w2 + zero b1
        # pad keep the math exact (ReLU(0) = 0).
        h_act = (jnp.dot(x, w1_ref[l], preferred_element_type=jnp.float32)
                 + b1_ref[l])
        h_act = jnp.maximum(h_act, 0.0)                  # ReLU
        h_act = (jnp.dot(h_act, w2_ref[l], preferred_element_type=jnp.float32)
                 + b2)

        x = _layer_norm(x + h_act, ln2w, ln2b)

    # ---------------- decoder: lane-dense output (V padded to 128) --------
    out_ref[...] = (jnp.dot(x, decw_ref[...], preferred_element_type=jnp.float32)
                    + decb_ref[...])


# ---------------------------------------------------------------------------
# Host-side helpers (one-time parameter prep + glue)
# ---------------------------------------------------------------------------
def positional_encoding(max_len, D):
    position = jnp.arange(max_len, dtype=jnp.float32)[:, None]
    div_term = jnp.exp(jnp.arange(0, D, 2, dtype=jnp.float32)
                       * (-math.log(10000.0) / D))
    pe = jnp.zeros((max_len, D), jnp.float32)
    pe = pe.at[:, 0::2].set(jnp.sin(position * div_term))
    pe = pe.at[:, 1::2].set(jnp.cos(position * div_term))
    return pe                                            # (max_len, D)


def init_params(key, V, D, F, L):
    """PyTorch-layout parameters (same conventions as the nn modules)."""
    initrange = 0.1
    ks = jax.random.split(key, 8)

    def u(k, shape, scale):
        return jax.random.uniform(k, shape, jnp.float32, -scale, scale)

    emb = u(ks[0], (V, D), initrange)                    # nn.Embedding weight
    dec_w = u(ks[1], (V, D), initrange)                  # nn.Linear(ninp, ntoken)
    dec_b = jnp.zeros((1, V), jnp.float32)

    ipw = u(ks[2], (L, 3 * D, D), 1.0 / math.sqrt(D))    # in_proj_weight
    ipb = jnp.zeros((L, 1, 3 * D), jnp.float32)          # in_proj_bias
    opw = u(ks[3], (L, D, D), 1.0 / math.sqrt(D))        # out_proj.weight
    opb = jnp.zeros((L, 1, D), jnp.float32)              # out_proj.bias

    l1w = u(ks[4], (L, F, D), 1.0 / math.sqrt(D))        # linear1
    l1b = u(ks[5], (L, 1, F), 1.0 / math.sqrt(D))
    l2w = u(ks[6], (L, D, F), 1.0 / math.sqrt(F))        # linear2
    l2b = u(ks[7], (L, 1, D), 1.0 / math.sqrt(F))

    ln1w = jnp.ones((L, 1, D), jnp.float32)
    ln1b = jnp.zeros((L, 1, D), jnp.float32)
    ln2w = jnp.ones((L, 1, D), jnp.float32)
    ln2b = jnp.zeros((L, 1, D), jnp.float32)

    return dict(emb=emb, dec_w=dec_w, dec_b=dec_b,
                ipw=ipw, ipb=ipb, opw=opw, opb=opb,
                ln1w=ln1w, ln1b=ln1b, ln2w=ln2w, ln2b=ln2b,
                l1w=l1w, l1b=l1b, l2w=l2w, l2b=l2b)


def prepare_params(params, *, nhead, max_len=256):
    """One-time transform: transpose / fuse / fold scales / pad / pack.

    Done once after init (not per forward call), so it is genuinely free.
    """
    emb = params['emb']
    V, D = emb.shape
    H = nhead
    Dh = D // H
    L = params['ipw'].shape[0]
    F = params['l1w'].shape[1]

    # fold sqrt(D) into the embedding table
    emb_s = emb * jnp.float32(math.sqrt(D))

    ipw, ipb = params['ipw'], params['ipb']              # (L,3D,D), (L,1,3D)
    scale = jnp.float32(1.0 / math.sqrt(Dh))

    wq_t = jnp.transpose(ipw[:, 0 * D:1 * D, :], (0, 2, 1)) * scale
    wk_t = jnp.transpose(ipw[:, 1 * D:2 * D, :], (0, 2, 1))
    wv_t = jnp.transpose(ipw[:, 2 * D:3 * D, :], (0, 2, 1))
    bq_s = ipb[:, :, 0 * D:1 * D] * scale
    bk = ipb[:, :, 1 * D:2 * D]
    bv = ipb[:, :, 2 * D:3 * D]

    # fused, lane-dense QKV weight: (L, D, QKVp), QKVp = 3D padded to 128
    QKVp = ((3 * D + 127) // 128) * 128
    wqkv = jnp.zeros((L, D, QKVp), jnp.float32)
    wqkv = wqkv.at[:, :, 0 * D:1 * D].set(wq_t)
    wqkv = wqkv.at[:, :, 1 * D:2 * D].set(wk_t)
    wqkv = wqkv.at[:, :, 2 * D:3 * D].set(wv_t)
    bqkv = jnp.zeros((L, 1, QKVp), jnp.float32)
    bqkv = bqkv.at[:, :, 0 * D:1 * D].set(bq_s)
    bqkv = bqkv.at[:, :, 1 * D:2 * D].set(bk)
    bqkv = bqkv.at[:, :, 2 * D:3 * D].set(bv)

    wo_t = jnp.transpose(params['opw'], (0, 2, 1))       # (L, D, D)

    # FFN hidden padded to a multiple of 128 (zero pad -> math exact w/ ReLU)
    Fp = ((F + 127) // 128) * 128
    w1_t = jnp.zeros((L, D, Fp), jnp.float32).at[:, :, :F].set(
        jnp.transpose(params['l1w'], (0, 2, 1)))
    b1_p = jnp.zeros((L, 1, Fp), jnp.float32).at[:, :, :F].set(params['l1b'])
    w2_t = jnp.zeros((L, Fp, D), jnp.float32).at[:, :F, :].set(
        jnp.transpose(params['l2w'], (0, 2, 1)))

    # pack the small per-layer (1, D) vectors into a single (L, 8, D) slab
    # rows: 0=out_proj bias, 1/2=ln1 w/b, 3/4=ln2 w/b, 5=linear2 bias, 6-7=pad
    vecD = jnp.zeros((L, 8, D), jnp.float32)
    vecD = vecD.at[:, 0:1, :].set(params['opb'])
    vecD = vecD.at[:, 1:2, :].set(params['ln1w'])
    vecD = vecD.at[:, 2:3, :].set(params['ln1b'])
    vecD = vecD.at[:, 3:4, :].set(params['ln2w'])
    vecD = vecD.at[:, 4:5, :].set(params['ln2b'])
    vecD = vecD.at[:, 5:6, :].set(params['l2b'])

    # lane-dense decoder: pad vocab up to a multiple of 128
    Vp = ((V + 127) // 128) * 128
    dec_w_t = jnp.zeros((D, Vp), jnp.float32).at[:, :V].set(params['dec_w'].T)
    dec_b_p = jnp.zeros((1, Vp), jnp.float32).at[:, :V].set(params['dec_b'])

    pe_full = positional_encoding(max_len, D)            # buffer, like PyTorch

    return dict(emb=emb_s, pe=pe_full,
                wqkv=wqkv, bqkv=bqkv, wo=wo_t, vecD=vecD,
                w1=w1_t, b1=b1_p, w2=w2_t,
                dec_w=dec_w_t, dec_b=dec_b_p,
                meta=dict(V=V, D=D, H=H, L=L, Vp=Vp, Fp=Fp))


def transformer_forward(tokens, prep):
    S, B = tokens.shape
    meta = prep['meta']
    V, D, H, L, Vp = meta['V'], meta['D'], meta['H'], meta['L'], meta['Vp']
    N = S * B

    # Embedding gather + positional encoding hoisted to the wrapper (XLA
    # gather) per perf review: the kernel receives one dense (N, D) VMEM
    # activation instead of doing N scalar-addressed row copies via scratch.
    # Rows are batch-major (row = b*S + s) so (batch, head) attention blocks
    # are contiguous static slices inside the kernel.
    tok_bm = tokens.T.reshape(N).astype(jnp.int32)       # batch-major tokens
    pe_bm = jnp.tile(prep['pe'][:S], (B, 1))             # (N, D)
    x0 = prep['emb'][tok_bm] + pe_bm                     # (N, D) f32
    # dropout omitted: eval/inference semantics (identity)

    kernel = functools.partial(transformer_kernel, S, B, D, H, L)

    inputs = (x0, prep['wqkv'], prep['bqkv'], prep['wo'], prep['vecD'],
              prep['w1'], prep['b1'], prep['w2'], prep['dec_w'], prep['dec_b'])

    vmem = pl.BlockSpec(memory_space=pltpu.MemorySpace.VMEM)

    # Gridless, fully VMEM-resident: total working set (weights + activations)
    # is < 300 KiB, so any grid / pipelining would be pure per-step overhead.
    # TODO(synk): when scaling vocab / seq / batch, add a row-parallel grid
    # axis and a V-tiled decoder (dimension_semantics=("parallel", ...)),
    # budget double-buffered tiles against v7x's 64 MiB VMEM, and store the
    # weights in bf16 with f32 accumulation.
    out_flat = pl.pallas_call(
        kernel,
        out_shape=jax.ShapeDtypeStruct((N, Vp), jnp.float32),
        in_specs=[vmem] * len(inputs),
        out_specs=vmem,
    )(*inputs)

    # strip lane padding; rows are batch-major -> (B, S, V) -> (S, B, V)
    return out_flat[:, :V].reshape(B, S, V).transpose(1, 0, 2)


# ---------------------------------------------------------------------------
if __name__ == "__main__":
    # Small, forward-consistent shapes.
    ntoken = 64      # vocabulary size
    ninp = 32        # model dim (divisible by nhead)
    nhead = 2
    nhid = 200       # FFN hidden dim (matches module global)
    nlayers = 2
    S, B = 8, 2      # (seq, batch), PyTorch non-batch_first convention

    key = jax.random.PRNGKey(0)
    pkey, tkey = jax.random.split(key)

    params = init_params(pkey, ntoken, ninp, nhid, nlayers)
    prep = prepare_params(params, nhead=nhead, max_len=256)   # one-time prep
    src = jax.random.randint(tkey, (S, B), 0, ntoken, dtype=jnp.int32)

    out = transformer_forward(src, prep)
    out = jax.block_until_ready(out)

    assert out.shape == (S, B, ntoken), out.shape
    assert bool(jnp.all(jnp.isfinite(out))), "non-finite output"
    print("KERNEL_OK")
</pallas_src>

<mosaic_0001>
module attributes {stable_mosaic.version = 11 : i64} {
  func.func @transformer_kernel(%arg0: memref<16x32xf32, #tpu.memory_space<vmem>>, %arg1: memref<2x32x128xf32, #tpu.memory_space<vmem>>, %arg2: memref<2x1x128xf32, #tpu.memory_space<vmem>>, %arg3: memref<2x32x32xf32, #tpu.memory_space<vmem>>, %arg4: memref<2x8x32xf32, #tpu.memory_space<vmem>>, %arg5: memref<2x32x256xf32, #tpu.memory_space<vmem>>, %arg6: memref<2x1x256xf32, #tpu.memory_space<vmem>>, %arg7: memref<2x256x32xf32, #tpu.memory_space<vmem>>, %arg8: memref<32x128xf32, #tpu.memory_space<vmem>>, %arg9: memref<1x128xf32, #tpu.memory_space<vmem>>, %arg10: memref<16x128xf32, #tpu.memory_space<vmem>>) attributes {dimension_semantics = [], scalar_prefetch = 0 : i64, scratch_operands = 0 : i64, tpu.core_type = #tpu.core_type<tc>} {
    %c0 = arith.constant 0 : index
    %c0_0 = arith.constant 0 : index
    %0 = vector.load %arg0[%c0, %c0_0] : memref<16x32xf32, #tpu.memory_space<vmem>>, vector<16x32xf32>
    %1 = tpu.iota {dimensions = array<i32: 0>} : vector<8x8xi32>
    %2 = tpu.iota {dimensions = array<i32: 1>} : vector<8x8xi32>
    %3 = arith.cmpi sle, %2, %1 : vector<8x8xi32>
    %cst = arith.constant 0.000000e+00 : f32
    %cst_1 = arith.constant -1.000000e+30 : f32
    %4 = vector.broadcast %cst : f32 to vector<8x8xf32>
    %5 = vector.broadcast %cst_1 : f32 to vector<8x8xf32>
    %6 = arith.select %3, %4, %5 : vector<8x8xi1>, vector<8x8xf32>
    %c0_2 = arith.constant 0 : index
    %c0_3 = arith.constant 0 : index
    %c0_4 = arith.constant 0 : index
    %7 = vector.load %arg4[%c0_2, %c0_3, %c0_4] : memref<2x8x32xf32, #tpu.memory_space<vmem>>, vector<1x8x32xf32>
    %8 = vector.shape_cast %7 : vector<1x8x32xf32> to vector<8x32xf32>
    %9 = vector.extract_strided_slice %8 {offsets = [0, 0], sizes = [1, 32], strides = [1, 1]} : vector<8x32xf32> to vector<1x32xf32>
    %10 = vector.extract_strided_slice %8 {offsets = [1, 0], sizes = [1, 32], strides = [1, 1]} : vector<8x32xf32> to vector<1x32xf32>
    %11 = vector.extract_strided_slice %8 {offsets = [2, 0], sizes = [1, 32], strides = [1, 1]} : vector<8x32xf32> to vector<1x32xf32>
    %12 = vector.extract_strided_slice %8 {offsets = [3, 0], sizes = [1, 32], strides = [1, 1]} : vector<8x32xf32> to vector<1x32xf32>
    %13 = vector.extract_strided_slice %8 {offsets = [4, 0], sizes = [1, 32], strides = [1, 1]} : vector<8x32xf32> to vector<1x32xf32>
    %14 = vector.extract_strided_slice %8 {offsets = [5, 0], sizes = [1, 32], strides = [1, 1]} : vector<8x32xf32> to vector<1x32xf32>
    %c0_5 = arith.constant 0 : index
    %c0_6 = arith.constant 0 : index
    %c0_7 = arith.constant 0 : index
    %15 = vector.load %arg1[%c0_5, %c0_6, %c0_7] : memref<2x32x128xf32, #tpu.memory_space<vmem>>, vector<1x32x128xf32>
    %16 = vector.shape_cast %15 : vector<1x32x128xf32> to vector<32x128xf32>
    %cst_8 = arith.constant dense<0.000000e+00> : vector<16x128xf32>
    %17 = tpu.matmul %0, %16, %cst_8 {dimension_numbers = #tpu.dot_dimension_numbers<[1], [0], [0], [1], [0, 0, 1, 1], [], []>} : vector<16x32xf32>, vector<32x128xf32>, vector<16x128xf32> -> vector<16x128xf32>
    %c0_9 = arith.constant 0 : index
    %c0_10 = arith.constant 0 : index
    %c0_11 = arith.constant 0 : index
    %18 = vector.load %arg2[%c0_9, %c0_10, %c0_11] : memref<2x1x128xf32, #tpu.memory_space<vmem>>, vector<1x1x128xf32>
    %19 = vector.shape_cast %18 : vector<1x1x128xf32> to vector<1x128xf32>
    %20 = vector.broadcast %19 : vector<1x128xf32> to vector<16x128xf32>
    %21 = arith.addf %17, %20 : vector<16x128xf32>
    %22 = vector.extract_strided_slice %21 {offsets = [0, 0], sizes = [16, 32], strides = [1, 1]} : vector<16x128xf32> to vector<16x32xf32>
    %23 = vector.extract_strided_slice %21 {offsets = [0, 32], sizes = [16, 32], strides = [1, 1]} : vector<16x128xf32> to vector<16x32xf32>
    %24 = vector.extract_strided_slice %21 {offsets = [0, 64], sizes = [16, 32], strides = [1, 1]} : vector<16x128xf32> to vector<16x32xf32>
    %25 = vector.extract_strided_slice %22 {offsets = [0, 0], sizes = [8, 16], strides = [1, 1]} : vector<16x32xf32> to vector<8x16xf32>
    %26 = vector.extract_strided_slice %23 {offsets = [0, 0], sizes = [8, 16], strides = [1, 1]} : vector<16x32xf32> to vector<8x16xf32>
    %27 = vector.extract_strided_slice %24 {offsets = [0, 0], sizes = [8, 16], strides = [1, 1]} : vector<16x32xf32> to vector<8x16xf32>
    %cst_12 = arith.constant dense<0.000000e+00> : vector<8x8xf32>
    %28 = tpu.matmul %25, %26, %cst_12 {dimension_numbers = #tpu.dot_dimension_numbers<[1], [1], [0], [0], [0, 0, 1, 0], [], []>} : vector<8x16xf32>, vector<8x16xf32>, vector<8x8xf32> -> vector<8x8xf32>
    %29 = arith.addf %28, %6 : vector<8x8xf32>
    %cst_13 = arith.constant dense<0xFF800000> : vector<8xf32>
    %30 = vector.multi_reduction <maximumf>, %29, %cst_13 [1] : vector<8x8xf32> to vector<8xf32>
    %31 = vector.shape_cast %30 : vector<8xf32> to vector<8x1xf32>
    %32 = vector.broadcast %31 : vector<8x1xf32> to vector<8x8xf32>
    %33 = arith.subf %29, %32 : vector<8x8xf32>
    %34 = math.exp %33 : vector<8x8xf32>
    %cst_14 = arith.constant dense<0.000000e+00> : vector<8xf32>
    %35 = vector.multi_reduction <add>, %34, %cst_14 [1] : vector<8x8xf32> to vector<8xf32>
    %36 = vector.shape_cast %35 : vector<8xf32> to vector<8x1xf32>
    %37 = vector.broadcast %36 : vector<8x1xf32> to vector<8x8xf32>
    %38 = arith.divf %34, %37 : vector<8x8xf32>
    %cst_15 = arith.constant dense<0.000000e+00> : vector<8x16xf32>
    %39 = tpu.matmul %38, %27, %cst_15 {dimension_numbers = #tpu.dot_dimension_numbers<[1], [0], [0], [1], [0, 0, 1, 1], [], []>} : vector<8x8xf32>, vector<8x16xf32>, vector<8x16xf32> -> vector<8x16xf32>
    %40 = vector.extract_strided_slice %22 {offsets = [0, 16], sizes = [8, 16], strides = [1, 1]} : vector<16x32xf32> to vector<8x16xf32>
    %41 = vector.extract_strided_slice %23 {offsets = [0, 16], sizes = [8, 16], strides = [1, 1]} : vector<16x32xf32> to vector<8x16xf32>
    %42 = vector.extract_strided_slice %24 {offsets = [0, 16], sizes = [8, 16], strides = [1, 1]} : vector<16x32xf32> to vector<8x16xf32>
    %cst_16 = arith.constant dense<0.000000e+00> : vector<8x8xf32>
    %43 = tpu.matmul %40, %41, %cst_16 {dimension_numbers = #tpu.dot_dimension_numbers<[1], [1], [0], [0], [0, 0, 1, 0], [], []>} : vector<8x16xf32>, vector<8x16xf32>, vector<8x8xf32> -> vector<8x8xf32>
    %44 = arith.addf %43, %6 : vector<8x8xf32>
    %cst_17 = arith.constant dense<0xFF800000> : vector<8xf32>
    %45 = vector.multi_reduction <maximumf>, %44, %cst_17 [1] : vector<8x8xf32> to vector<8xf32>
    %46 = vector.shape_cast %45 : vector<8xf32> to vector<8x1xf32>
    %47 = vector.broadcast %46 : vector<8x1xf32> to vector<8x8xf32>
    %48 = arith.subf %44, %47 : vector<8x8xf32>
    %49 = math.exp %48 : vector<8x8xf32>
    %cst_18 = arith.constant dense<0.000000e+00> : vector<8xf32>
    %50 = vector.multi_reduction <add>, %49, %cst_18 [1] : vector<8x8xf32> to vector<8xf32>
    %51 = vector.shape_cast %50 : vector<8xf32> to vector<8x1xf32>
    %52 = vector.broadcast %51 : vector<8x1xf32> to vector<8x8xf32>
    %53 = arith.divf %49, %52 : vector<8x8xf32>
    %cst_19 = arith.constant dense<0.000000e+00> : vector<8x16xf32>
    %54 = tpu.matmul %53, %42, %cst_19 {dimension_numbers = #tpu.dot_dimension_numbers<[1], [0], [0], [1], [0, 0, 1, 1], [], []>} : vector<8x8xf32>, vector<8x16xf32>, vector<8x16xf32> -> vector<8x16xf32>
    %55 = tpu.concatenate %39, %54 in 1 : vector<8x16xf32>, vector<8x16xf32> -> vector<8x32xf32>
    %56 = vector.extract_strided_slice %22 {offsets = [8, 0], sizes = [8, 16], strides = [1, 1]} : vector<16x32xf32> to vector<8x16xf32>
    %57 = vector.extract_strided_slice %23 {offsets = [8, 0], sizes = [8, 16], strides = [1, 1]} : vector<16x32xf32> to vector<8x16xf32>
    %58 = vector.extract_strided_slice %24 {offsets = [8, 0], sizes = [8, 16], strides = [1, 1]} : vector<16x32xf32> to vector<8x16xf32>
    %cst_20 = arith.constant dense<0.000000e+00> : vector<8x8xf32>
    %59 = tpu.matmul %56, %57, %cst_20 {dimension_numbers = #tpu.dot_dimension_numbers<[1], [1], [0], [0], [0, 0, 1, 0], [], []>} : vector<8x16xf32>, vector<8x16xf32>, vector<8x8xf32> -> vector<8x8xf32>
    %60 = arith.addf %59, %6 : vector<8x8xf32>
    %cst_21 = arith.constant dense<0xFF800000> : vector<8xf32>
    %61 = vector.multi_reduction <maximumf>, %60, %cst_21 [1] : vector<8x8xf32> to vector<8xf32>
    %62 = vector.shape_cast %61 : vector<8xf32> to vector<8x1xf32>
    %63 = vector.broadcast %62 : vector<8x1xf32> to vector<8x8xf32>
    %64 = arith.subf %60, %63 : vector<8x8xf32>
    %65 = math.exp %64 : vector<8x8xf32>
    %cst_22 = arith.constant dense<0.000000e+00> : vector<8xf32>
    %66 = vector.multi_reduction <add>, %65, %cst_22 [1] : vector<8x8xf32> to vector<8xf32>
    %67 = vector.shape_cast %66 : vector<8xf32> to vector<8x1xf32>
    %68 = vector.broadcast %67 : vector<8x1xf32> to vector<8x8xf32>
    %69 = arith.divf %65, %68 : vector<8x8xf32>
    %cst_23 = arith.constant dense<0.000000e+00> : vector<8x16xf32>
    %70 = tpu.matmul %69, %58, %cst_23 {dimension_numbers = #tpu.dot_dimension_numbers<[1], [0], [0], [1], [0, 0, 1, 1], [], []>} : vector<8x8xf32>, vector<8x16xf32>, vector<8x16xf32> -> vector<8x16xf32>
    %71 = vector.extract_strided_slice %22 {offsets = [8, 16], sizes = [8, 16], strides = [1, 1]} : vector<16x32xf32> to vector<8x16xf32>
    %72 = vector.extract_strided_slice %23 {offsets = [8, 16], sizes = [8, 16], strides = [1, 1]} : vector<16x32xf32> to vector<8x16xf32>
    %73 = vector.extract_strided_slice %24 {offsets = [8, 16], sizes = [8, 16], strides = [1, 1]} : vector<16x32xf32> to vector<8x16xf32>
    %cst_24 = arith.constant dense<0.000000e+00> : vector<8x8xf32>
    %74 = tpu.matmul %71, %72, %cst_24 {dimension_numbers = #tpu.dot_dimension_numbers<[1], [1], [0], [0], [0, 0, 1, 0], [], []>} : vector<8x16xf32>, vector<8x16xf32>, vector<8x8xf32> -> vector<8x8xf32>
    %75 = arith.addf %74, %6 : vector<8x8xf32>
    %cst_25 = arith.constant dense<0xFF800000> : vector<8xf32>
    %76 = vector.multi_reduction <maximumf>, %75, %cst_25 [1] : vector<8x8xf32> to vector<8xf32>
    %77 = vector.shape_cast %76 : vector<8xf32> to vector<8x1xf32>
    %78 = vector.broadcast %77 : vector<8x1xf32> to vector<8x8xf32>
    %79 = arith.subf %75, %78 : vector<8x8xf32>
    %80 = math.exp %79 : vector<8x8xf32>
    %cst_26 = arith.constant dense<0.000000e+00> : vector<8xf32>
    %81 = vector.multi_reduction <add>, %80, %cst_26 [1] : vector<8x8xf32> to vector<8xf32>
    %82 = vector.shape_cast %81 : vector<8xf32> to vector<8x1xf32>
    %83 = vector.broadcast %82 : vector<8x1xf32> to vector<8x8xf32>
    %84 = arith.divf %80, %83 : vector<8x8xf32>
    %cst_27 = arith.constant dense<0.000000e+00> : vector<8x16xf32>
    %85 = tpu.matmul %84, %73, %cst_27 {dimension_numbers = #tpu.dot_dimension_numbers<[1], [0], [0], [1], [0, 0, 1, 1], [], []>} : vector<8x8xf32>, vector<8x16xf32>, vector<8x16xf32> -> vector<8x16xf32>
    %86 = tpu.concatenate %70, %85 in 1 : vector<8x16xf32>, vector<8x16xf32> -> vector<8x32xf32>
    %87 = tpu.concatenate %55, %86 in 0 : vector<8x32xf32>, vector<8x32xf32> -> vector<16x32xf32>
    %c0_28 = arith.constant 0 : index
    %c0_29 = arith.constant 0 : index
    %c0_30 = arith.constant 0 : index
    %88 = vector.load %arg3[%c0_28, %c0_29, %c0_30] : memref<2x32x32xf32, #tpu.memory_space<vmem>>, vector<1x32x32xf32>
    %89 = vector.shape_cast %88 : vector<1x32x32xf32> to vector<32x32xf32>
    %cst_31 = arith.constant dense<0.000000e+00> : vector<16x32xf32>
    %90 = tpu.matmul %87, %89, %cst_31 {dimension_numbers = #tpu.dot_dimension_numbers<[1], [0], [0], [1], [0, 0, 1, 1], [], []>} : vector<16x32xf32>, vector<32x32xf32>, vector<16x32xf32> -> vector<16x32xf32>
    %91 = vector.broadcast %9 : vector<1x32xf32> to vector<16x32xf32>
    %92 = arith.addf %90, %91 : vector<16x32xf32>
    %93 = arith.addf %0, %92 : vector<16x32xf32>
    %cst_32 = arith.constant dense<0.000000e+00> : vector<16xf32>
    %94 = vector.multi_reduction <add>, %93, %cst_32 [1] : vector<16x32xf32> to vector<16xf32>
    %95 = vector.shape_cast %94 : vector<16xf32> to vector<16x1xf32>
    %cst_33 = arith.constant 3.200000e+01 : f32
    %96 = vector.broadcast %cst_33 : f32 to vector<16x1xf32>
    %97 = arith.divf %95, %96 : vector<16x1xf32>
    %98 = vector.broadcast %97 : vector<16x1xf32> to vector<16x32xf32>
    %99 = arith.subf %93, %98 : vector<16x32xf32>
    %100 = arith.mulf %99, %99 : vector<16x32xf32>
    %cst_34 = arith.constant dense<0.000000e+00> : vector<16xf32>
    %101 = vector.multi_reduction <add>, %100, %cst_34 [1] : vector<16x32xf32> to vector<16xf32>
    %102 = vector.shape_cast %101 : vector<16xf32> to vector<16x1xf32>
    %cst_35 = arith.constant 3.200000e+01 : f32
    %103 = vector.broadcast %cst_35 : f32 to vector<16x1xf32>
    %104 = arith.divf %102, %103 : vector<16x1xf32>
    %105 = vector.broadcast %97 : vector<16x1xf32> to vector<16x32xf32>
    %106 = arith.subf %93, %105 : vector<16x32xf32>
    %cst_36 = arith.constant 9.99999974E-6 : f32
    %107 = vector.broadcast %cst_36 : f32 to vector<16x1xf32>
    %108 = arith.addf %104, %107 : vector<16x1xf32>
    %109 = math.rsqrt %108 : vector<16x1xf32>
    %110 = vector.broadcast %109 : vector<16x1xf32> to vector<16x32xf32>
    %111 = arith.mulf %106, %110 : vector<16x32xf32>
    %112 = vector.broadcast %10 : vector<1x32xf32> to vector<16x32xf32>
    %113 = arith.mulf %111, %112 : vector<16x32xf32>
    %114 = vector.broadcast %11 : vector<1x32xf32> to vector<16x32xf32>
    %115 = arith.addf %113, %114 : vector<16x32xf32>
    %c0_37 = arith.constant 0 : index
    %c0_38 = arith.constant 0 : index
    %c0_39 = arith.constant 0 : index
    %116 = vector.load %arg5[%c0_37, %c0_38, %c0_39] : memref<2x32x256xf32, #tpu.memory_space<vmem>>, vector<1x32x256xf32>
    %117 = vector.shape_cast %116 : vector<1x32x256xf32> to vector<32x256xf32>
    %cst_40 = arith.constant dense<0.000000e+00> : vector<16x256xf32>
    %118 = tpu.matmul %115, %117, %cst_40 {dimension_numbers = #tpu.dot_dimension_numbers<[1], [0], [0], [1], [0, 0, 1, 1], [], []>} : vector<16x32xf32>, vector<32x256xf32>, vector<16x256xf32> -> vector<16x256xf32>
    %c0_41 = arith.constant 0 : index
    %c0_42 = arith.constant 0 : index
    %c0_43 = arith.constant 0 : index
    %119 = vector.load %arg6[%c0_41, %c0_42, %c0_43] : memref<2x1x256xf32, #tpu.memory_space<vmem>>, vector<1x1x256xf32>
    %120 = vector.shape_cast %119 : vector<1x1x256xf32> to vector<1x256xf32>
    %121 = vector.broadcast %120 : vector<1x256xf32> to vector<16x256xf32>
    %122 = arith.addf %118, %121 : vector<16x256xf32>
    %cst_44 = arith.constant 0.000000e+00 : f32
    %123 = vector.broadcast %cst_44 : f32 to vector<16x256xf32>
    %124 = arith.maximumf %122, %123 : vector<16x256xf32>
    %c0_45 = arith.constant 0 : index
    %c0_46 = arith.constant 0 : index
    %c0_47 = arith.constant 0 : index
    %125 = vector.load %arg7[%c0_45, %c0_46, %c0_47] : memref<2x256x32xf32, #tpu.memory_space<vmem>>, vector<1x256x32xf32>
    %126 = vector.shape_cast %125 : vector<1x256x32xf32> to vector<256x32xf32>
    %cst_48 = arith.constant dense<0.000000e+00> : vector<16x32xf32>
    %127 = tpu.matmul %124, %126, %cst_48 {dimension_numbers = #tpu.dot_dimension_numbers<[1], [0], [0], [1], [0, 0, 1, 1], [], []>} : vector<16x256xf32>, vector<256x32xf32>, vector<16x32xf32> -> vector<16x32xf32>
    %128 = vector.broadcast %14 : vector<1x32xf32> to vector<16x32xf32>
    %129 = arith.addf %127, %128 : vector<16x32xf32>
    %130 = arith.addf %115, %129 : vector<16x32xf32>
    %cst_49 = arith.constant dense<0.000000e+00> : vector<16xf32>
    %131 = vector.multi_reduction <add>, %130, %cst_49 [1] : vector<16x32xf32> to vector<16xf32>
    %132 = vector.shape_cast %131 : vector<16xf32> to vector<16x1xf32>
    %cst_50 = arith.constant 3.200000e+01 : f32
    %133 = vector.broadcast %cst_50 : f32 to vector<16x1xf32>
    %134 = arith.divf %132, %133 : vector<16x1xf32>
    %135 = vector.broadcast %134 : vector<16x1xf32> to vector<16x32xf32>
    %136 = arith.subf %130, %135 : vector<16x32xf32>
    %137 = arith.mulf %136, %136 : vector<16x32xf32>
    %cst_51 = arith.constant dense<0.000000e+00> : vector<16xf32>
    %138 = vector.multi_reduction <add>, %137, %cst_51 [1] : vector<16x32xf32> to vector<16xf32>
    %139 = vector.shape_cast %138 : vector<16xf32> to vector<16x1xf32>
    %cst_52 = arith.constant 3.200000e+01 : f32
    %140 = vector.broadcast %cst_52 : f32 to vector<16x1xf32>
    %141 = arith.divf %139, %140 : vector<16x1xf32>
    %142 = vector.broadcast %134 : vector<16x1xf32> to vector<16x32xf32>
    %143 = arith.subf %130, %142 : vector<16x32xf32>
    %cst_53 = arith.constant 9.99999974E-6 : f32
    %144 = vector.broadcast %cst_53 : f32 to vector<16x1xf32>
    %145 = arith.addf %141, %144 : vector<16x1xf32>
    %146 = math.rsqrt %145 : vector<16x1xf32>
    %147 = vector.broadcast %146 : vector<16x1xf32> to vector<16x32xf32>
    %148 = arith.mulf %143, %147 : vector<16x32xf32>
    %149 = vector.broadcast %12 : vector<1x32xf32> to vector<16x32xf32>
    %150 = arith.mulf %148, %149 : vector<16x32xf32>
    %151 = vector.broadcast %13 : vector<1x32xf32> to vector<16x32xf32>
    %152 = arith.addf %150, %151 : vector<16x32xf32>
    %c1 = arith.constant 1 : index
    %c0_54 = arith.constant 0 : index
    %c0_55 = arith.constant 0 : index
    %153 = vector.load %arg4[%c1, %c0_54, %c0_55] : memref<2x8x32xf32, #tpu.memory_space<vmem>>, vector<1x8x32xf32>
    %154 = vector.shape_cast %153 : vector<1x8x32xf32> to vector<8x32xf32>
    %155 = vector.extract_strided_slice %154 {offsets = [0, 0], sizes = [1, 32], strides = [1, 1]} : vector<8x32xf32> to vector<1x32xf32>
    %156 = vector.extract_strided_slice %154 {offsets = [1, 0], sizes = [1, 32], strides = [1, 1]} : vector<8x32xf32> to vector<1x32xf32>
    %157 = vector.extract_strided_slice %154 {offsets = [2, 0], sizes = [1, 32], strides = [1, 1]} : vector<8x32xf32> to vector<1x32xf32>
    %158 = vector.extract_strided_slice %154 {offsets = [3, 0], sizes = [1, 32], strides = [1, 1]} : vector<8x32xf32> to vector<1x32xf32>
    %159 = vector.extract_strided_slice %154 {offsets = [4, 0], sizes = [1, 32], strides = [1, 1]} : vector<8x32xf32> to vector<1x32xf32>
    %160 = vector.extract_strided_slice %154 {offsets = [5, 0], sizes = [1, 32], strides = [1, 1]} : vector<8x32xf32> to vector<1x32xf32>
    %c1_56 = arith.constant 1 : index
    %c0_57 = arith.constant 0 : index
    %c0_58 = arith.constant 0 : index
    %161 = vector.load %arg1[%c1_56, %c0_57, %c0_58] : memref<2x32x128xf32, #tpu.memory_space<vmem>>, vector<1x32x128xf32>
    %162 = vector.shape_cast %161 : vector<1x32x128xf32> to vector<32x128xf32>
    %cst_59 = arith.constant dense<0.000000e+00> : vector<16x128xf32>
    %163 = tpu.matmul %152, %162, %cst_59 {dimension_numbers = #tpu.dot_dimension_numbers<[1], [0], [0], [1], [0, 0, 1, 1], [], []>} : vector<16x32xf32>, vector<32x128xf32>, vector<16x128xf32> -> vector<16x128xf32>
    %c1_60 = arith.constant 1 : index
    %c0_61 = arith.constant 0 : index
    %c0_62 = arith.constant 0 : index
    %164 = vector.load %arg2[%c1_60, %c0_61, %c0_62] : memref<2x1x128xf32, #tpu.memory_space<vmem>>, vector<1x1x128xf32>
    %165 = vector.shape_cast %164 : vector<1x1x128xf32> to vector<1x128xf32>
    %166 = vector.broadcast %165 : vector<1x128xf32> to vector<16x128xf32>
    %167 = arith.addf %163, %166 : vector<16x128xf32>
    %168 = vector.extract_strided_slice %167 {offsets = [0, 0], sizes = [16, 32], strides = [1, 1]} : vector<16x128xf32> to vector<16x32xf32>
    %169 = vector.extract_strided_slice %167 {offsets = [0, 32], sizes = [16, 32], strides = [1, 1]} : vector<16x128xf32> to vector<16x32xf32>
    %170 = vector.extract_strided_slice %167 {offsets = [0, 64], sizes = [16, 32], strides = [1, 1]} : vector<16x128xf32> to vector<16x32xf32>
    %171 = vector.extract_strided_slice %168 {offsets = [0, 0], sizes = [8, 16], strides = [1, 1]} : vector<16x32xf32> to vector<8x16xf32>
    %172 = vector.extract_strided_slice %169 {offsets = [0, 0], sizes = [8, 16], strides = [1, 1]} : vector<16x32xf32> to vector<8x16xf32>
    %173 = vector.extract_strided_slice %170 {offsets = [0, 0], sizes = [8, 16], strides = [1, 1]} : vector<16x32xf32> to vector<8x16xf32>
    %cst_63 = arith.constant dense<0.000000e+00> : vector<8x8xf32>
    %174 = tpu.matmul %171, %172, %cst_63 {dimension_numbers = #tpu.dot_dimension_numbers<[1], [1], [0], [0], [0, 0, 1, 0], [], []>} : vector<8x16xf32>, vector<8x16xf32>, vector<8x8xf32> -> vector<8x8xf32>
    %175 = arith.addf %174, %6 : vector<8x8xf32>
    %cst_64 = arith.constant dense<0xFF800000> : vector<8xf32>
    %176 = vector.multi_reduction <maximumf>, %175, %cst_64 [1] : vector<8x8xf32> to vector<8xf32>
    %177 = vector.shape_cast %176 : vector<8xf32> to vector<8x1xf32>
    %178 = vector.broadcast %177 : vector<8x1xf32> to vector<8x8xf32>
    %179 = arith.subf %175, %178 : vector<8x8xf32>
    %180 = math.exp %179 : vector<8x8xf32>
    %cst_65 = arith.constant dense<0.000000e+00> : vector<8xf32>
    %181 = vector.multi_reduction <add>, %180, %cst_65 [1] : vector<8x8xf32> to vector<8xf32>
    %182 = vector.shape_cast %181 : vector<8xf32> to vector<8x1xf32>
    %183 = vector.broadcast %182 : vector<8x1xf32> to vector<8x8xf32>
    %184 = arith.divf %180, %183 : vector<8x8xf32>
    %cst_66 = arith.constant dense<0.000000e+00> : vector<8x16xf32>
    %185 = tpu.matmul %184, %173, %cst_66 {dimension_numbers = #tpu.dot_dimension_numbers<[1], [0], [0], [1], [0, 0, 1, 1], [], []>} : vector<8x8xf32>, vector<8x16xf32>, vector<8x16xf32> -> vector<8x16xf32>
    %186 = vector.extract_strided_slice %168 {offsets = [0, 16], sizes = [8, 16], strides = [1, 1]} : vector<16x32xf32> to vector<8x16xf32>
    %187 = vector.extract_strided_slice %169 {offsets = [0, 16], sizes = [8, 16], strides = [1, 1]} : vector<16x32xf32> to vector<8x16xf32>
    %188 = vector.extract_strided_slice %170 {offsets = [0, 16], sizes = [8, 16], strides = [1, 1]} : vector<16x32xf32> to vector<8x16xf32>
    %cst_67 = arith.constant dense<0.000000e+00> : vector<8x8xf32>
    %189 = tpu.matmul %186, %187, %cst_67 {dimension_numbers = #tpu.dot_dimension_numbers<[1], [1], [0], [0], [0, 0, 1, 0], [], []>} : vector<8x16xf32>, vector<8x16xf32>, vector<8x8xf32> -> vector<8x8xf32>
    %190 = arith.addf %189, %6 : vector<8x8xf32>
    %cst_68 = arith.constant dense<0xFF800000> : vector<8xf32>
    %191 = vector.multi_reduction <maximumf>, %190, %cst_68 [1] : vector<8x8xf32> to vector<8xf32>
    %192 = vector.shape_cast %191 : vector<8xf32> to vector<8x1xf32>
    %193 = vector.broadcast %192 : vector<8x1xf32> to vector<8x8xf32>
    %194 = arith.subf %190, %193 : vector<8x8xf32>
    %195 = math.exp %194 : vector<8x8xf32>
    %cst_69 = arith.constant dense<0.000000e+00> : vector<8xf32>
    %196 = vector.multi_reduction <add>, %195, %cst_69 [1] : vector<8x8xf32> to vector<8xf32>
    %197 = vector.shape_cast %196 : vector<8xf32> to vector<8x1xf32>
    %198 = vector.broadcast %197 : vector<8x1xf32> to vector<8x8xf32>
    %199 = arith.divf %195, %198 : vector<8x8xf32>
    %cst_70 = arith.constant dense<0.000000e+00> : vector<8x16xf32>
    %200 = tpu.matmul %199, %188, %cst_70 {dimension_numbers = #tpu.dot_dimension_numbers<[1], [0], [0], [1], [0, 0, 1, 1], [], []>} : vector<8x8xf32>, vector<8x16xf32>, vector<8x16xf32> -> vector<8x16xf32>
    %201 = tpu.concatenate %185, %200 in 1 : vector<8x16xf32>, vector<8x16xf32> -> vector<8x32xf32>
    %202 = vector.extract_strided_slice %168 {offsets = [8, 0], sizes = [8, 16], strides = [1, 1]} : vector<16x32xf32> to vector<8x16xf32>
    %203 = vector.extract_strided_slice %169 {offsets = [8, 0], sizes = [8, 16], strides = [1, 1]} : vector<16x32xf32> to vector<8x16xf32>
    %204 = vector.extract_strided_slice %170 {offsets = [8, 0], sizes = [8, 16], strides = [1, 1]} : vector<16x32xf32> to vector<8x16xf32>
    %cst_71 = arith.constant dense<0.000000e+00> : vector<8x8xf32>
    %205 = tpu.matmul %202, %203, %cst_71 {dimension_numbers = #tpu.dot_dimension_numbers<[1], [1], [0], [0], [0, 0, 1, 0], [], []>} : vector<8x16xf32>, vector<8x16xf32>, vector<8x8xf32> -> vector<8x8xf32>
    %206 = arith.addf %205, %6 : vector<8x8xf32>
    %cst_72 = arith.constant dense<0xFF800000> : vector<8xf32>
    %207 = vector.multi_reduction <maximumf>, %206, %cst_72 [1] : vector<8x8xf32> to vector<8xf32>
    %208 = vector.shape_cast %207 : vector<8xf32> to vector<8x1xf32>
    %209 = vector.broadcast %208 : vector<8x1xf32> to vector<8x8xf32>
    %210 = arith.subf %206, %209 : vector<8x8xf32>
    %211 = math.exp %210 : vector<8x8xf32>
    %cst_73 = arith.constant dense<0.000000e+00> : vector<8xf32>
    %212 = vector.multi_reduction <add>, %211, %cst_73 [1] : vector<8x8xf32> to vector<8xf32>
    %213 = vector.shape_cast %212 : vector<8xf32> to vector<8x1xf32>
    %214 = vector.broadcast %213 : vector<8x1xf32> to vector<8x8xf32>
    %215 = arith.divf %211, %214 : vector<8x8xf32>
    %cst_74 = arith.constant dense<0.000000e+00> : vector<8x16xf32>
    %216 = tpu.matmul %215, %204, %cst_74 {dimension_numbers = #tpu.dot_dimension_numbers<[1], [0], [0], [1], [0, 0, 1, 1], [], []>} : vector<8x8xf32>, vector<8x16xf32>, vector<8x16xf32> -> vector<8x16xf32>
    %217 = vector.extract_strided_slice %168 {offsets = [8, 16], sizes = [8, 16], strides = [1, 1]} : vector<16x32xf32> to vector<8x16xf32>
    %218 = vector.extract_strided_slice %169 {offsets = [8, 16], sizes = [8, 16], strides = [1, 1]} : vector<16x32xf32> to vector<8x16xf32>
    %219 = vector.extract_strided_slice %170 {offsets = [8, 16], sizes = [8, 16], strides = [1, 1]} : vector<16x32xf32> to vector<8x16xf32>
    %cst_75 = arith.constant dense<0.000000e+00> : vector<8x8xf32>
    %220 = tpu.matmul %217, %218, %cst_75 {dimension_numbers = #tpu.dot_dimension_numbers<[1], [1], [0], [0], [0, 0, 1, 0], [], []>} : vector<8x16xf32>, vector<8x16xf32>, vector<8x8xf32> -> vector<8x8xf32>
    %221 = arith.addf %220, %6 : vector<8x8xf32>
    %cst_76 = arith.constant dense<0xFF800000> : vector<8xf32>
    %222 = vector.multi_reduction <maximumf>, %221, %cst_76 [1] : vector<8x8xf32> to vector<8xf32>
    %223 = vector.shape_cast %222 : vector<8xf32> to vector<8x1xf32>
    %224 = vector.broadcast %223 : vector<8x1xf32> to vector<8x8xf32>
    %225 = arith.subf %221, %224 : vector<8x8xf32>
    %226 = math.exp %225 : vector<8x8xf32>
    %cst_77 = arith.constant dense<0.000000e+00> : vector<8xf32>
    %227 = vector.multi_reduction <add>, %226, %cst_77 [1] : vector<8x8xf32> to vector<8xf32>
    %228 = vector.shape_cast %227 : vector<8xf32> to vector<8x1xf32>
    %229 = vector.broadcast %228 : vector<8x1xf32> to vector<8x8xf32>
    %230 = arith.divf %226, %229 : vector<8x8xf32>
    %cst_78 = arith.constant dense<0.000000e+00> : vector<8x16xf32>
    %231 = tpu.matmul %230, %219, %cst_78 {dimension_numbers = #tpu.dot_dimension_numbers<[1], [0], [0], [1], [0, 0, 1, 1], [], []>} : vector<8x8xf32>, vector<8x16xf32>, vector<8x16xf32> -> vector<8x16xf32>
    %232 = tpu.concatenate %216, %231 in 1 : vector<8x16xf32>, vector<8x16xf32> -> vector<8x32xf32>
    %233 = tpu.concatenate %201, %232 in 0 : vector<8x32xf32>, vector<8x32xf32> -> vector<16x32xf32>
    %c1_79 = arith.constant 1 : index
    %c0_80 = arith.constant 0 : index
    %c0_81 = arith.constant 0 : index
    %234 = vector.load %arg3[%c1_79, %c0_80, %c0_81] : memref<2x32x32xf32, #tpu.memory_space<vmem>>, vector<1x32x32xf32>
    %235 = vector.shape_cast %234 : vector<1x32x32xf32> to vector<32x32xf32>
    %cst_82 = arith.constant dense<0.000000e+00> : vector<16x32xf32>
    %236 = tpu.matmul %233, %235, %cst_82 {dimension_numbers = #tpu.dot_dimension_numbers<[1], [0], [0], [1], [0, 0, 1, 1], [], []>} : vector<16x32xf32>, vector<32x32xf32>, vector<16x32xf32> -> vector<16x32xf32>
    %237 = vector.broadcast %155 : vector<1x32xf32> to vector<16x32xf32>
    %238 = arith.addf %236, %237 : vector<16x32xf32>
    %239 = arith.addf %152, %238 : vector<16x32xf32>
    %cst_83 = arith.constant dense<0.000000e+00> : vector<16xf32>
    %240 = vector.multi_reduction <add>, %239, %cst_83 [1] : vector<16x32xf32> to vector<16xf32>
    %241 = vector.shape_cast %240 : vector<16xf32> to vector<16x1xf32>
    %cst_84 = arith.constant 3.200000e+01 : f32
    %242 = vector.broadcast %cst_84 : f32 to vector<16x1xf32>
    %243 = arith.divf %241, %242 : vector<16x1xf32>
    %244 = vector.broadcast %243 : vector<16x1xf32> to vector<16x32xf32>
    %245 = arith.subf %239, %244 : vector<16x32xf32>
    %246 = arith.mulf %245, %245 : vector<16x32xf32>
    %cst_85 = arith.constant dense<0.000000e+00> : vector<16xf32>
    %247 = vector.multi_reduction <add>, %246, %cst_85 [1] : vector<16x32xf32> to vector<16xf32>
    %248 = vector.shape_cast %247 : vector<16xf32> to vector<16x1xf32>
    %cst_86 = arith.constant 3.200000e+01 : f32
    %249 = vector.broadcast %cst_86 : f32 to vector<16x1xf32>
    %250 = arith.divf %248, %249 : vector<16x1xf32>
    %251 = vector.broadcast %243 : vector<16x1xf32> to vector<16x32xf32>
    %252 = arith.subf %239, %251 : vector<16x32xf32>
    %cst_87 = arith.constant 9.99999974E-6 : f32
    %253 = vector.broadcast %cst_87 : f32 to vector<16x1xf32>
    %254 = arith.addf %250, %253 : vector<16x1xf32>
    %255 = math.rsqrt %254 : vector<16x1xf32>
    %256 = vector.broadcast %255 : vector<16x1xf32> to vector<16x32xf32>
    %257 = arith.mulf %252, %256 : vector<16x32xf32>
    %258 = vector.broadcast %156 : vector<1x32xf32> to vector<16x32xf32>
    %259 = arith.mulf %257, %258 : vector<16x32xf32>
    %260 = vector.broadcast %157 : vector<1x32xf32> to vector<16x32xf32>
    %261 = arith.addf %259, %260 : vector<16x32xf32>
    %c1_88 = arith.constant 1 : index
    %c0_89 = arith.constant 0 : index
    %c0_90 = arith.constant 0 : index
    %262 = vector.load %arg5[%c1_88, %c0_89, %c0_90] : memref<2x32x256xf32, #tpu.memory_space<vmem>>, vector<1x32x256xf32>
    %263 = vector.shape_cast %262 : vector<1x32x256xf32> to vector<32x256xf32>
    %cst_91 = arith.constant dense<0.000000e+00> : vector<16x256xf32>
    %264 = tpu.matmul %261, %263, %cst_91 {dimension_numbers = #tpu.dot_dimension_numbers<[1], [0], [0], [1], [0, 0, 1, 1], [], []>} : vector<16x32xf32>, vector<32x256xf32>, vector<16x256xf32> -> vector<16x256xf32>
    %c1_92 = arith.constant 1 : index
    %c0_93 = arith.constant 0 : index
    %c0_94 = arith.constant 0 : index
    %265 = vector.load %arg6[%c1_92, %c0_93, %c0_94] : memref<2x1x256xf32, #tpu.memory_space<vmem>>, vector<1x1x256xf32>
    %266 = vector.shape_cast %265 : vector<1x1x256xf32> to vector<1x256xf32>
    %267 = vector.broadcast %266 : vector<1x256xf32> to vector<16x256xf32>
    %268 = arith.addf %264, %267 : vector<16x256xf32>
    %cst_95 = arith.constant 0.000000e+00 : f32
    %269 = vector.broadcast %cst_95 : f32 to vector<16x256xf32>
    %270 = arith.maximumf %268, %269 : vector<16x256xf32>
    %c1_96 = arith.constant 1 : index
    %c0_97 = arith.constant 0 : index
    %c0_98 = arith.constant 0 : index
    %271 = vector.load %arg7[%c1_96, %c0_97, %c0_98] : memref<2x256x32xf32, #tpu.memory_space<vmem>>, vector<1x256x32xf32>
    %272 = vector.shape_cast %271 : vector<1x256x32xf32> to vector<256x32xf32>
    %cst_99 = arith.constant dense<0.000000e+00> : vector<16x32xf32>
    %273 = tpu.matmul %270, %272, %cst_99 {dimension_numbers = #tpu.dot_dimension_numbers<[1], [0], [0], [1], [0, 0, 1, 1], [], []>} : vector<16x256xf32>, vector<256x32xf32>, vector<16x32xf32> -> vector<16x32xf32>
    %274 = vector.broadcast %160 : vector<1x32xf32> to vector<16x32xf32>
    %275 = arith.addf %273, %274 : vector<16x32xf32>
    %276 = arith.addf %261, %275 : vector<16x32xf32>
    %cst_100 = arith.constant dense<0.000000e+00> : vector<16xf32>
    %277 = vector.multi_reduction <add>, %276, %cst_100 [1] : vector<16x32xf32> to vector<16xf32>
    %278 = vector.shape_cast %277 : vector<16xf32> to vector<16x1xf32>
    %cst_101 = arith.constant 3.200000e+01 : f32
    %279 = vector.broadcast %cst_101 : f32 to vector<16x1xf32>
    %280 = arith.divf %278, %279 : vector<16x1xf32>
    %281 = vector.broadcast %280 : vector<16x1xf32> to vector<16x32xf32>
    %282 = arith.subf %276, %281 : vector<16x32xf32>
    %283 = arith.mulf %282, %282 : vector<16x32xf32>
    %cst_102 = arith.constant dense<0.000000e+00> : vector<16xf32>
    %284 = vector.multi_reduction <add>, %283, %cst_102 [1] : vector<16x32xf32> to vector<16xf32>
    %285 = vector.shape_cast %284 : vector<16xf32> to vector<16x1xf32>
    %cst_103 = arith.constant 3.200000e+01 : f32
    %286 = vector.broadcast %cst_103 : f32 to vector<16x1xf32>
    %287 = arith.divf %285, %286 : vector<16x1xf32>
    %288 = vector.broadcast %280 : vector<16x1xf32> to vector<16x32xf32>
    %289 = arith.subf %276, %288 : vector<16x32xf32>
    %cst_104 = arith.constant 9.99999974E-6 : f32
    %290 = vector.broadcast %cst_104 : f32 to vector<16x1xf32>
    %291 = arith.addf %287, %290 : vector<16x1xf32>
    %292 = math.rsqrt %291 : vector<16x1xf32>
    %293 = vector.broadcast %292 : vector<16x1xf32> to vector<16x32xf32>
    %294 = arith.mulf %289, %293 : vector<16x32xf32>
    %295 = vector.broadcast %158 : vector<1x32xf32> to vector<16x32xf32>
    %296 = arith.mulf %294, %295 : vector<16x32xf32>
    %297 = vector.broadcast %159 : vector<1x32xf32> to vector<16x32xf32>
    %298 = arith.addf %296, %297 : vector<16x32xf32>
    %c0_105 = arith.constant 0 : index
    %c0_106 = arith.constant 0 : index
    %299 = vector.load %arg8[%c0_105, %c0_106] : memref<32x128xf32, #tpu.memory_space<vmem>>, vector<32x128xf32>
    %cst_107 = arith.constant dense<0.000000e+00> : vector<16x128xf32>
    %300 = tpu.matmul %298, %299, %cst_107 {dimension_numbers = #tpu.dot_dimension_numbers<[1], [0], [0], [1], [0, 0, 1, 1], [], []>} : vector<16x32xf32>, vector<32x128xf32>, vector<16x128xf32> -> vector<16x128xf32>
    %c0_108 = arith.constant 0 : index
    %c0_109 = arith.constant 0 : index
    %301 = vector.load %arg9[%c0_108, %c0_109] : memref<1x128xf32, #tpu.memory_space<vmem>>, vector<1x128xf32>
    %302 = vector.broadcast %301 : vector<1x128xf32> to vector<16x128xf32>
    %303 = arith.addf %300, %302 : vector<16x128xf32>
    %c0_110 = arith.constant 0 : index
    %c0_111 = arith.constant 0 : index
    %304 = vector.load %arg10[%c0_110, %c0_111] : memref<16x128xf32, #tpu.memory_space<vmem>>, vector<16x128xf32>
    tpu.vector_store %arg10[%c0_110, %c0_111], %303 {strides = array<i32>} : memref<16x128xf32, #tpu.memory_space<vmem>>, vector<16x128xf32>,
    return
  }
}

</mosaic_0001>

<bundles_post_ra>
// kernel: tpu_custom_call.1
= control target key start
LH: loop header
LB: loop body
LE: loop exit
PB: predicated region body
PF: predicated region fallthrough
CT: control target
= control target key end

     0   :  { %vm56_vm0 = vcmask 261120   ;;  %s3710_s0 = inlined_call_operand.vmem [shape: f32[16,32], index: 0, kind: input, shape index: {}]   ;;  %s3711_s1 = inlined_call_operand.vmem [shape: f32[2,32,128], index: 1, kind: input, shape index: {}]   ;;  %s3712_s2 = inlined_call_operand.vmem [shape: f32[2,1,128], index: 2, kind: input, shape index: {}]   ;;  %s3713_s3 = inlined_call_operand.vmem [shape: f32[2,32,32], index: 3, kind: input, shape index: {}]   ;;  %s3714_s4 = inlined_call_operand.vmem [shape: f32[2,8,32], index: 4, kind: input, shape index: {}]   ;;  %s3715_s5 = inlined_call_operand.vmem [shape: f32[2,32,256], index: 5, kind: input, shape index: {}]   ;;  %s3716_s6 = inlined_call_operand.vmem [shape: f32[2,1,256], index: 6, kind: input, shape index: {}]   ;;  %s3717_s7 = inlined_call_operand.vmem [shape: f32[2,256,32], index: 7, kind: input, shape index: {}]   ;;  %s3718_s8 = inlined_call_operand.vmem [shape: f32[32,128], index: 8, kind: input, shape index: {}]   ;;  %s3719_s9 = inlined_call_operand.vmem [shape: f32[1,128], index: 9, kind: input, shape index: {}]   ;;  %s3720_s10 = inlined_call_operand.hbm [shape: f32[16,128], index: 10, kind: output, shape index: {}]  }
   0x1   :  { %v45_v0 = vld [vmem:[%s3711_s1] sm:$0xff]  ;;  %v46_v1 = vld [vmem:[%s3711_s1 + $0x8] sm:$0xff]  ;;  %v47_v2 = vld [vmem:[%s3711_s1 + $0x10] sm:$0xff] }
   0x2   :  { %v2826_v3 = vpack.c.bf16 %v46_v1, %v45_v0  ;;  %v48_v4 = vld [vmem:[%s3711_s1 + $0x18] sm:$0xff]  ;;  %v3112_v5 = vld [vmem:[%s3710_s0] sm:$0xff] }
   0x3   :  { %v2830_v6 = vpack.c.bf16 %v48_v4, %v47_v2  ;;  %2699 = vmatprep.mubr.msk.f32.mxu0 %vm56_vm0, %v3112_v5 }
   0x4   :  { %15 = vsyncpa [#allocation3], 0  ;;  %2827 = vmatprep.subr.bf16.mxu0 %v2826_v3  ;;  %v3119_v7 = vld [vmem:[%s3710_s0 + $0x8] sm:$0xff]  ;;  %v3030_v8 = vmov 0.0   ;;  %vm3031_vm1 = vmmov 0   ;;  %s3032_s0 = smov 112   ;;  %v38_v20 = vlaneseq }
   0x5   :  { %2829 = vmatpush3.bf16.msra.mxu0 %v2826_v3  ;;  %2707 = vmatprep.subr.mxu1 %v3030_v8  ;;  %v2461_v9 = vld [vmem:[%s3712_s2] ss:$0 sm:$0xff]  ;;  %s3033_s27 = smov 96   ;;  %s3034_s28 = smov 80   ;;  %vm141_vm2 = vcmask 130048   ;;  %vm216_vm4 = vcmask 64512  }
   0x6   :  { %2831 = vmatprep.subr.bf16.mxu0 %v2830_v6  ;;  %2709 = vmatprep.mubr.msk.f32.mxu1 %vm3031_vm1, %v3030_v8  ;;  %v3167_v21 = vshrl.u32 %v38_v20, 7  ;;  %v41_v22 = vand.u32 127, %v38_v20  ;;  %v3035_v23 = vmov -1e+30   ;;  %s3036_s29 = smov 64   ;;  %s3037_s30 = smov 48  }
   0x7   :  { %v811_v20 = vld [vmem:[%s3713_s3 + $0x18] sm:$0xff]  ;;  %s3038_s19 = smov 16   ;;  %s3039_s20 = smov [#allocation2]  }
   0x8   :  { %vm42_vm3 = vcmp.le.s32.totalorder %v41_v22, %v3167_v21  ;;  %s2450_s21 = sshll.u32 %s3039_s20, 4  ;;  %s2451_s21 = int_to_ptr.vmem [resolvable:$true] %s2450_s21 }
   0x9   :  { %2833 = vmatpush3.bf16.msra.mxu0 %v2830_v6  ;;  %v3170_v24 = vsel %vm42_vm3, 0.0, %v3035_v23  ;;  %p3011_p1 = scmp.lt.s32.totalorder %s2451_s21, %s2451_s21 }
   0xa   :  { %2702 = vmatprep.subr.mxu0 %v3030_v8 }
   0xc   :  { %2700 = vmatmul.mubr.msk.f32.vlgmr.msra.gmra.mrb[0].mxu0 %vm56_vm0, %v3119_v7 }
   0xd   :  { %2704 = vmatprep.mubr.msk.f32.mxu0 %vm3031_vm1, %v3030_v8 }
  0xdf   :  { %v2701_v10 = vpop.f32.mrb[0].mxu0 }
  0xe0   :  { %v129_v11 = vpop.f32.mrb[1].mxu0  ;;  %v3138_v13 = vadd.f32 %v2701_v10, %v2461_v9 }
  0xe1   :  { %v3132_v12 = vadd.f32 %v2461_v9, %v129_v11 }
  0xe3   :  { %304 = vrot.lane.b32.xlu1 %v3132_v12, %s3032_s0  ;;  %139 = vrot.lane.b32.xlu0 %v3132_v12, %s3033_s27 }
  0xe7   :  { %475 = vrot.lane.b32.xlu1 %v3138_v13, %s3033_s27  ;;  %306 = vrot.lane.b32.xlu0 %v3132_v12, %s3034_s28 }
  0xeb   :  { %638 = vrot.lane.b32.xlu1 %v3138_v13, %s3032_s0  ;;  %640 = vrot.lane.b32.xlu0 %v3138_v13, %s3034_s28 }
 0x155   :  { %v140_v14 = vpop.permute.xlu0 %139  ;;  %v305_v15 = vpop.permute.xlu1 %304 }
 0x156   :  { %2703 = vmatpush3.xpose.msk.msra.mxu0 %vm141_vm2, %v140_v14 }
 0x157   :  { %2712 = vmatprep.subr.mxu0 %v3030_v8 }
 0x159   :  { %2705 = vmatmul.mubr.msk.f32.vlgmr.msra.gmra.mrb[2].mxu0 %vm141_vm2, %v3132_v12  ;;  %v307_v16 = vpop.permute.xlu0 %306  ;;  %v476_v17 = vpop.permute.xlu1 %475 }
 0x15a   :  { %2713 = vmatpush3.xpose.msk.msra.mxu0 %vm141_vm2, %v307_v16  ;;  %2714 = vmatprep.mubr.msk.f32.mxu0 %vm3031_vm1, %v3030_v8  ;;  %v808_v16 = vld [vmem:[%s3713_s3] sm:$0xff] }
 0x15b   :  { %2722 = vmatprep.subr.mxu0 %v3030_v8 }
 0x15d   :  { %2715 = vmatmul.mubr.msk.f32.vlgmr.msra.gmra.mrb[4].mxu0 %vm141_vm2, %v305_v15  ;;  %v641_v18 = vpop.permute.xlu0 %640  ;;  %v639_v19 = vpop.permute.xlu1 %638 }
 0x15e   :  { %2723 = vmatpush3.xpose.msk.msra.mxu0 %vm141_vm2, %v476_v17  ;;  %2724 = vmatprep.mubr.msk.f32.mxu0 %vm3031_vm1, %v3030_v8  ;;  %v809_v17 = vld [vmem:[%s3713_s3 + $0x8] sm:$0xff] }
 0x15f   :  { %2732 = vmatprep.subr.mxu0 %v3030_v8 }
 0x161   :  { %2725 = vmatmul.mubr.msk.f32.vlgmr.msra.gmra.mrb[6].mxu0 %vm141_vm2, %v3138_v13 }
 0x162   :  { %2733 = vmatpush3.xpose.msk.msra.mxu0 %vm141_vm2, %v641_v18  ;;  %2734 = vmatprep.mubr.msk.f32.mxu0 %vm3031_vm1, %v3030_v8  ;;  %v2834_v18 = vpack.c.bf16 %v809_v17, %v808_v16  ;;  %v934_v16 = vsub.s32 2, %v3167_v21 }
 0x164   :  { %2835 = vmatprep.subr.bf16.mxu0 %v2834_v18 }
 0x165   :  { %2735 = vmatmul.mubr.msk.f32.vlgmr.msra.gmra.mrb[8].mxu0 %vm141_vm2, %v639_v19  ;;  %v810_v19 = vld [vmem:[%s3713_s3 + $0x10] sm:$0xff] }
 0x166   :  { %v2838_v22 = vpack.c.bf16 %v811_v20, %v810_v19  ;;  %2837 = vmatpush3.bf16.msra.mxu0 %v2834_v18 }
 0x168   :  { %2839 = vmatprep.subr.bf16.mxu0 %v2838_v22 }
 0x16a   :  { %2841 = vmatpush3.bf16.msra.mxu0 %v2838_v22  ;;  %v1045_v22 = vld [vmem:[%s3717_s7] sm:$0xff] }
 0x22c   :  { %v212_v25 = vpop.f32.mrb[2].mxu0 }
 0x22d   :  { %v213_v26 = vadd.f32 %v212_v25, %v3170_v24  ;;  %v2706_v27 = vpop.f32.mrb[3].mxu0 }
 0x22f   :  { %v217_v28 = vsel %vm216_vm4, %v213_v26, -inf }
 0x230   :  { %218 = vmax.xlane.f32.xlu0 %v217_v28  ;;  %v378_v29 = vpop.f32.mrb[4].mxu0 }
 0x231   :  { %v379_v30 = vadd.f32 %v378_v29, %v3170_v24  ;;  %v2716_v31 = vpop.f32.mrb[5].mxu0 }
 0x233   :  { %v382_v32 = vsel %vm216_vm4, %v379_v30, -inf }
 0x234   :  { %383 = vmax.xlane.f32.xlu1 %v382_v32  ;;  %v547_v33 = vpop.f32.mrb[6].mxu0 }
 0x235   :  { %v548_v34 = vadd.f32 %v547_v33, %v3170_v24  ;;  %v2726_v35 = vpop.f32.mrb[7].mxu0 }
 0x237   :  { %v551_v36 = vsel %vm216_vm4, %v548_v34, -inf }
 0x238   :  { %552 = vmax.xlane.f32.xlu0 %v551_v36  ;;  %v712_v37 = vpop.f32.mrb[8].mxu0  ;;  %v3225_v36 = vsub.s32 0, %v3167_v21 }
 0x239   :  { %v713_v38 = vadd.f32 %v712_v37, %v3170_v24  ;;  %v2736_v39 = vpop.f32.mrb[9].mxu0  ;;  %v3230_v37 = vld [vmem:[%s3714_s4] sm:$0xff] }
 0x23a   :  { %v935_v20 = vrot.slane %v3230_v37, %v934_v16 }
 0x23b   :  { %v716_v40 = vsel %vm216_vm4, %v713_v38, -inf }
 0x23c   :  { %717 = vmax.xlane.f32.xlu0 %v716_v40 }
 0x245   :  { %228 = vrot.lane.b32.xlu1 %v3132_v12, %s3036_s29 }
 0x2bd   :  { %v219_v41 = vpop.xlane.xlu0 %218 }
 0x2be   :  { %v220_v42 = vsub.f32 %v213_v26, %v219_v41 }
 0x2c0   :  { %v221_v43 = vmul.f32 1.442695, %v220_v42 }
 0x2c1   :  { %v384_v44 = vpop.xlane.xlu1 %383 }
 0x2c2   :  { %2958 = vpow2.f32 %v221_v43  ;;  %v385_v45 = vsub.f32 %v379_v30, %v384_v44 }
 0x2c4   :  { %v386_v46 = vmul.f32 1.442695, %v385_v45 }
 0x2c5   :  { %v229_v47 = vpop.permute.xlu1 %228  ;;  %v553_v48 = vpop.xlane.xlu0 %552 }
 0x2c6   :  { %2960 = vpow2.f32 %v386_v46  ;;  %v554_v49 = vsub.f32 %v548_v34, %v553_v48  ;;  %2708 = vmatpush3.msra.mxu1 %v229_v47 }
 0x2c7   :  { %2717 = vmatprep.subr.mxu1 %v3030_v8 }
 0x2c8   :  { %v555_v50 = vmul.f32 1.442695, %v554_v49 }
 0x2c9   :  { %v718_v51 = vpop.xlane.xlu0 %717 }
 0x2ca   :  { %2962 = vpow2.f32 %v555_v50  ;;  %v719_v52 = vsub.f32 %v713_v38, %v718_v51  ;;  %v815_v38 = vrot.slane %v3230_v37, %v3225_v36 }
 0x2cc   :  { %v2959_v53 = vpop.eup %2958  ;;  %v720_v54 = vmul.f32 1.442695, %v719_v52 }
 0x2cd   :  { %v223_v55 = vsel %vm216_vm4, %v2959_v53, 0.0 }
 0x2ce   :  { %2964 = vpow2.f32 %v720_v54  ;;  %224 = vadd.xlane.f32.xlu1 %v223_v55 }
 0x2d0   :  { %v2961_v56 = vpop.eup %2960 }
 0x2d1   :  { %v388_v57 = vsel %vm216_vm4, %v2961_v56, 0.0 }
 0x2d2   :  { %389 = vadd.xlane.f32.xlu0 %v388_v57 }
 0x2d4   :  { %v2963_v58 = vpop.eup %2962 }
 0x2d5   :  { %v557_v59 = vsel %vm216_vm4, %v2963_v58, 0.0 }
 0x2d6   :  { %558 = vadd.xlane.f32.xlu1 %v557_v59  ;;  %v940_v59 = vld [vmem:[%s3715_s5 + $0x10] sm:$0xff] }
 0x2d8   :  { %v2965_v60 = vpop.eup %2964 }
 0x2d9   :  { %v722_v61 = vsel %vm216_vm4, %v2965_v60, 0.0 }
 0x2da   :  { %723 = vadd.xlane.f32.xlu0 %v722_v61  ;;  %v943_v61 = vld [vmem:[%s3715_s5 + $0x28] sm:$0xff] }
 0x2e7   :  { %562 = vrot.lane.b32.xlu1 %v3138_v13, %s3036_s29 }
 0x2eb   :  { %727 = vrot.lane.b32.xlu1 %v3138_v13, %s3037_s30 }
 0x2f0   :  { %393 = vrot.lane.b32.xlu0 %v3132_v12, %s3037_s30 }
 0x35b   :  { %v225_v62 = vpop.xlane.xlu1 %224 }
 0x35c   :  { %2966 = vrcp.f32 %v225_v62  ;;  %v945_v62 = vld [vmem:[%s3715_s5 + $0x38] sm:$0xff] }
 0x35f   :  { %v390_v63 = vpop.xlane.xlu0 %389 }
 0x360   :  { %2968 = vrcp.f32 %v390_v63  ;;  %v942_v63 = vld [vmem:[%s3715_s5 + $0x20] sm:$0xff] }
 0x363   :  { %v559_v0 = vpop.xlane.xlu1 %558 }
 0x364   :  { %2970 = vrcp.f32 %v559_v0  ;;  %v2846_v0 = vpack.c.bf16 %v945_v62, %v943_v61  ;;  %v1073_v61 = vld [vmem:[%s3717_s7 + $0xe0] sm:$0xff]  ;;  %v1074_v62 = vld [vmem:[%s3717_s7 + $0xe8] sm:$0xff] }
 0x366   :  { %v2967_v1 = vpop.eup %2966 }
 0x367   :  { %v724_v2 = vpop.xlane.xlu0 %723  ;;  %v227_v3 = vmul.f32 %v2967_v1, %v2959_v53  ;;  %v563_v9 = vpop.permute.xlu1 %562  ;;  %v944_v1 = vld [vmem:[%s3715_s5 + $0x30] sm:$0xff] }
 0x368   :  { %2972 = vrcp.f32 %v724_v2  ;;  %v2848_v2 = vpack.c.bf16 %v944_v1, %v942_v63  ;;  %v1057_v1 = vld [vmem:[%s3717_s7 + $0x60] sm:$0xff] }
 0x369   :  { %2710 = vmatmul.mubr.msk.f32.vlgmr.msra.gmra.mrb[0].mxu1 %vm216_vm4, %v227_v3  ;;  %v1061_v3 = vld [vmem:[%s3717_s7 + $0x80] sm:$0xff] }
 0x36a   :  { %v2969_v4 = vpop.eup %2968  ;;  %2719 = vmatprep.mubr.msk.f32.mxu1 %vm3031_vm1, %v3030_v8 }
 0x36b   :  { %v392_v6 = vmul.f32 %v2969_v4, %v2961_v56  ;;  %v394_v10 = vpop.permute.xlu0 %393  ;;  %v728_v13 = vpop.permute.xlu1 %727  ;;  %v941_v56 = vld [vmem:[%s3715_s5 + $0x18] sm:$0xff]  ;;  %v1062_v4 = vld [vmem:[%s3717_s7 + $0x88] sm:$0xff] }
 0x36c   :  { %2718 = vmatpush3.msra.mxu1 %v394_v10 }
 0x36d   :  { %2720 = vmatmul.mubr.msk.f32.vlgmr.msra.gmra.mrb[2].mxu1 %vm216_vm4, %v392_v6  ;;  %2727 = vmatprep.subr.mxu1 %v3030_v8  ;;  %v2850_v6 = vpack.c.bf16 %v1062_v4, %v1061_v3  ;;  %v1075_v4 = vld [vmem:[%s3717_s7 + $0xf0] sm:$0xff] }
 0x36e   :  { %v2971_v11 = vpop.eup %2970  ;;  %2728 = vmatpush3.msra.mxu1 %v563_v9  ;;  %2729 = vmatprep.mubr.msk.f32.mxu1 %vm3031_vm1, %v3030_v8 }
 0x36f   :  { %v561_v12 = vmul.f32 %v2971_v11, %v2963_v58  ;;  %2737 = vmatprep.subr.mxu1 %v3030_v8  ;;  %v938_v58 = vld [vmem:[%s3715_s5] sm:$0xff] }
 0x371   :  { %2730 = vmatmul.mubr.msk.f32.vlgmr.msra.gmra.mrb[4].mxu1 %vm216_vm4, %v561_v12 }
 0x372   :  { %v2973_v14 = vpop.eup %2972  ;;  %2738 = vmatpush3.msra.mxu1 %v728_v13  ;;  %2739 = vmatprep.mubr.msk.f32.mxu1 %vm3031_vm1, %v3030_v8 }
 0x373   :  { %v726_v15 = vmul.f32 %v2973_v14, %v2965_v60  ;;  %v2844_v60 = vpack.c.bf16 %v940_v59, %v938_v58  ;;  %v1055_v59 = vld [vmem:[%s3717_s7 + $0x50] sm:$0xff] }
 0x375   :  { %2740 = vmatmul.mubr.msk.f32.vlgmr.msra.gmra.mrb[6].mxu1 %vm216_vm4, %v726_v15  ;;  %v3271_v15 = vsub.s32 1, %v3167_v21 }
 0x377   :  { %v929_v17 = vrot.slane %v3230_v37, %v3271_v15 }
 0x43c   :  { %v300_v23 = vpop.f32.mrb[0].mxu1 }
 0x43d   :  { %v2711_v25 = vpop.f32.mrb[1].mxu1 }
 0x43e   :  { %v1063_v25 = vld [vmem:[%s3717_s7 + $0x90] sm:$0xff] }
 0x440   :  { %v465_v26 = vpop.f32.mrb[2].mxu1 }
 0x441   :  { %470 = vrot.lane.b32.xlu0 %v465_v26, %s3038_s19  ;;  %v2721_v27 = vpop.f32.mrb[3].mxu1  ;;  %v1064_v26 = vld [vmem:[%s3717_s7 + $0x98] sm:$0xff] }
 0x444   :  { %v634_v28 = vpop.f32.mrb[4].mxu1 }
 0x445   :  { %v2731_v29 = vpop.f32.mrb[5].mxu1 }
 0x448   :  { %v799_v30 = vpop.f32.mrb[6].mxu1 }
 0x449   :  { %804 = vrot.lane.b32.xlu1 %v799_v30, %s3038_s19  ;;  %v2741_v31 = vpop.f32.mrb[7].mxu1 }
 0x4b3   :  { %v471_v32 = vpop.permute.xlu0 %470 }
 0x4b4   :  { %v473_v33 = vsel %vm141_vm2, %v300_v23, %v471_v32  ;;  %v1046_v23 = vld [vmem:[%s3717_s7 + $0x8] sm:$0xff]  ;;  %v2854_v32 = vpack.c.bf16 %v1064_v26, %v1063_v25 }
 0x4b5   :  { %2750 = vmatprep.mubr.msk.f32.mxu0 %vm56_vm0, %v473_v33  ;;  %v2852_v29 = vpack.c.bf16 %v1046_v23, %v1045_v22  ;;  %v1047_v33 = vld [vmem:[%s3717_s7 + $0x10] sm:$0xff] }
 0x4bb   :  { %v805_v34 = vpop.permute.xlu1 %804 }
 0x4bc   :  { %v807_v35 = vsel %vm141_vm2, %v634_v28, %v805_v34  ;;  %v1048_v34 = vld [vmem:[%s3717_s7 + $0x18] sm:$0xff] }
 0x4bd   :  { %2751 = vmatmul.mubr.msk.f32.vlgmr.msra.gmra.mrb[10].mxu0 %vm56_vm0, %v807_v35  ;;  %v1065_v35 = vld [vmem:[%s3717_s7 + $0xa0] sm:$0xff] }
 0x4be   :  { %1028 = vmatprep.mubr.f32.mxu0 %v3030_v8 }
 0x590   :  { %v2752_v39 = vpop.f32.mrb[10].mxu0 }
 0x591   :  { %v894_v40 = vadd.f32 %v2752_v39, %v815_v38  ;;  %v888_v41 = vpop.f32.mrb[11].mxu0 }
 0x592   :  { %v889_v42 = vadd.f32 %v888_v41, %v815_v38  ;;  %v1066_v38 = vld [vmem:[%s3717_s7 + $0xa8] sm:$0xff] }
 0x593   :  { %v898_v43 = vadd.f32 %v894_v40, %v3119_v7  ;;  %v2856_v40 = vpack.c.bf16 %v1048_v34, %v1047_v33  ;;  %v1079_v33 = vsub.s32 5, %v3167_v21 }
 0x594   :  { %v897_v44 = vadd.f32 %v889_v42, %v3112_v5  ;;  %v939_v5 = vld [vmem:[%s3715_s5 + $0x8] sm:$0xff]  ;;  %v2858_v42 = vpack.c.bf16 %v1066_v38, %v1065_v35 }
 0x595   :  { %v902_v45 = vsel %vm56_vm0, %v898_v43, 0.0  ;;  %v2842_v57 = vpack.c.bf16 %v941_v56, %v939_v5  ;;  %v1071_v5 = vld [vmem:[%s3717_s7 + $0xd0] sm:$0xff]  ;;  %v1072_v56 = vld [vmem:[%s3717_s7 + $0xd8] sm:$0xff]  ;;  %v1080_v35 = vrot.slane %v3230_v37, %v1079_v33 }
 0x596   :  { %903 = vadd.xlane.f32.xlu1 %v902_v45  ;;  %v899_v46 = vsel %vm56_vm0, %v897_v44, 0.0  ;;  %v1067_v45 = vld [vmem:[%s3717_s7 + $0xb0] sm:$0xff]  ;;  %v2870_v58 = vpack.c.bf16 %v1072_v56, %v1071_v5 }
 0x597   :  { %900 = vadd.xlane.f32.xlu0 %v899_v46  ;;  %2843 = vmatprep.subr.bf16.mxu0 %v2842_v57  ;;  %v1068_v46 = vld [vmem:[%s3717_s7 + $0xb8] sm:$0xff] }
 0x598   :  { %2845 = vmatpush1.bf16.msra.mxu0 %v2844_v60  ;;  %v1056_v60 = vld [vmem:[%s3717_s7 + $0x58] sm:$0xff] }
 0x599   :  { %2847 = vmatprep.subr.bf16.mxu0 %v2846_v0  ;;  %v2872_v63 = vpack.c.bf16 %v1056_v60, %v1055_v59  ;;  %v2874_v0 = vpack.c.bf16 %v1074_v62, %v1073_v61  ;;  %v2483_v59 = vld [vmem:[%s3711_s1 + $0x30] sm:$0xff]  ;;  %v2484_v60 = vld [vmem:[%s3711_s1 + $0x38] sm:$0xff] }
 0x59a   :  { %v2886_v61 = vpack.c.bf16 %v2484_v60, %v2483_v59 }
 0x59c   :  { %2849 = vmatpush1.bf16.msra.mxu0 %v2848_v2  ;;  %v1058_v2 = vld [vmem:[%s3717_s7 + $0x68] sm:$0xff] }
 0x59d   :  { %2851 = vmatprep.subr.bf16.mxu0 %v2850_v6  ;;  %v2876_v3 = vpack.c.bf16 %v1058_v2, %v1057_v1  ;;  %v1076_v6 = vld [vmem:[%s3717_s7 + $0xf8] sm:$0xff] }
 0x623   :  { %v904_v47 = vpop.xlane.xlu1 %903 }
 0x624   :  { %v907_v48 = vmul.f32 0.03125, %v904_v47  ;;  %v901_v49 = vpop.xlane.xlu0 %900 }
 0x625   :  { %v906_v50 = vmul.f32 0.03125, %v901_v49  ;;  %v1051_v49 = vld [vmem:[%s3717_s7 + $0x30] sm:$0xff] }
 0x626   :  { %v909_v51 = vsub.f32 %v898_v43, %v907_v48  ;;  %v1049_v43 = vld [vmem:[%s3717_s7 + $0x20] sm:$0xff]  ;;  %v2862_v48 = vpack.c.bf16 %v1068_v46, %v1067_v45 }
 0x627   :  { %v908_v52 = vsub.f32 %v897_v44, %v906_v50  ;;  %v1050_v44 = vld [vmem:[%s3717_s7 + $0x28] sm:$0xff]  ;;  %v1052_v50 = vld [vmem:[%s3717_s7 + $0x38] sm:$0xff] }
 0x628   :  { %v911_v55 = vmul.f32 %v909_v51, %v909_v51  ;;  %v2860_v47 = vpack.c.bf16 %v1050_v44, %v1049_v43 }
 0x629   :  { %v910_v53 = vmul.f32 %v908_v52, %v908_v52 }
 0x62a   :  { %v915_v7 = vsel %vm56_vm0, %v911_v55, 0.0  ;;  %v1053_v55 = vld [vmem:[%s3717_s7 + $0x40] sm:$0xff] }
 0x62b   :  { %v912_v54 = vsel %vm56_vm0, %v910_v53, 0.0  ;;  %v2864_v53 = vpack.c.bf16 %v1052_v50, %v1051_v49 }
 0x62c   :  { %913 = vadd.xlane.f32.xlu0 %v912_v54 }
 0x630   :  { %916 = vadd.xlane.f32.xlu0 %v915_v7  ;;  %v1054_v7 = vld [vmem:[%s3717_s7 + $0x48] sm:$0xff] }
 0x631   :  { %v2868_v57 = vpack.c.bf16 %v1054_v7, %v1053_v55 }
 0x6b9   :  { %v914_v9 = vpop.xlane.xlu0 %913 }
 0x6ba   :  { %v918_v10 = vmul.f32 0.03125, %v914_v9  ;;  %v2878_v9 = vpack.c.bf16 %v1076_v6, %v1075_v4  ;;  %v1186_v4 = vsub.s32 3, %v3167_v21  ;;  %v1192_v6 = vsub.s32 4, %v3167_v21 }
 0x6bc   :  { %v920_v11 = vadd.f32 1e-05, %v918_v10  ;;  %v1059_v10 = vld [vmem:[%s3717_s7 + $0x70] sm:$0xff] }
 0x6bd   :  { %v917_v12 = vpop.xlane.xlu0 %916 }
 0x6be   :  { %2974 = vrsqrt.f32 %v920_v11  ;;  %v919_v13 = vmul.f32 0.03125, %v917_v12  ;;  %v1060_v11 = vld [vmem:[%s3717_s7 + $0x78] sm:$0xff] }
 0x6bf   :  { %v2880_v12 = vpack.c.bf16 %v1060_v11, %v1059_v10 }
 0x6c0   :  { %v921_v14 = vadd.f32 1e-05, %v919_v13  ;;  %v946_v13 = vld [vmem:[%s3716_s6] sm:$0x3] }
 0x6c2   :  { %2976 = vrsqrt.f32 %v921_v14  ;;  %v951_v14 = vrot.slane %v946_v13, %v3225_v36 }
 0x6c8   :  { %v2975_v18 = vpop.eup %2974 }
 0x6c9   :  { %v924_v19 = vmul.f32 %v2975_v18, %v908_v52  ;;  %v1070_v52 = vld [vmem:[%s3717_s7 + $0xc8] sm:$0xff] }
 0x6cb   :  { %v930_v27 = vmul.f32 %v929_v17, %v924_v19 }
 0x6cc   :  { %v2977_v28 = vpop.eup %2976 }
 0x6cd   :  { %v3291_v30 = vadd.f32 %v935_v20, %v930_v27  ;;  %v925_v31 = vmul.f32 %v2977_v28, %v909_v51  ;;  %v1069_v51 = vld [vmem:[%s3717_s7 + $0xc0] sm:$0xff] }
 0x6ce   :  { %v2866_v54 = vpack.c.bf16 %v1070_v52, %v1069_v51 }
 0x6cf   :  { %2478 = vmatmul.mubr.msk.f32.vlgmr.msra.gmra.mrb[12].mxu0 %vm56_vm0, %v3291_v30  ;;  %v931_v39 = vmul.f32 %v929_v17, %v925_v31  ;;  %v955_v17 = vrot.slane %v946_v13, %v3271_v15 }
 0x6d0   :  { %1034 = vmatprep.mubr.f32.mxu0 %v3030_v8  ;;  %2853 = vmatpush3.bf16.msra.mxu0 %v2852_v29 }
 0x6d1   :  { %v3308_v41 = vadd.f32 %v935_v20, %v931_v39  ;;  %2855 = vmatprep.subr.bf16.mxu0 %v2854_v32 }
 0x6d3   :  { %2479 = vmatmul.mubr.msk.f32.gmra.mrb[14].mxu0 %vm56_vm0, %v3308_v41 }
 0x6d4   :  { %2857 = vmatpush3.bf16.msra.mxu0 %v2856_v40 }
 0x6d5   :  { %2859 = vmatprep.subr.bf16.mxu0 %v2858_v42 }
 0x6d8   :  { %2861 = vmatpush3.bf16.msra.mxu0 %v2860_v47 }
 0x6d9   :  { %2863 = vmatprep.subr.bf16.mxu0 %v2862_v48 }
 0x6dc   :  { %2865 = vmatpush3.bf16.msra.mxu0 %v2864_v53 }
 0x6dd   :  { %2867 = vmatprep.subr.bf16.mxu0 %v2866_v54 }
 0x6e0   :  { %2869 = vmatpush3.bf16.msra.mxu0 %v2868_v57  ;;  %v2482_v57 = vld [vmem:[%s3711_s1 + $0x28] sm:$0xff] }
 0x6e1   :  { %2871 = vmatprep.subr.bf16.mxu0 %v2870_v58 }
 0x6e4   :  { %2873 = vmatpush3.bf16.msra.mxu0 %v2872_v63 }
 0x6e5   :  { %2875 = vmatprep.subr.bf16.mxu0 %v2874_v0 }
 0x6e8   :  { %2877 = vmatpush3.bf16.msra.mxu0 %v2876_v3 }
 0x6e9   :  { %2879 = vmatprep.subr.bf16.mxu0 %v2878_v9  ;;  %v1187_v9 = vrot.slane %v3230_v37, %v1186_v4 }
 0x6ec   :  { %2881 = vmatpush3.bf16.msra.mxu0 %v2880_v12  ;;  %v1193_v12 = vrot.slane %v3230_v37, %v1192_v6  ;;  %v2486_v37 = vld [vmem:[%s3712_s2 + $0x1] ss:$0 sm:$0xff] }
 0x6ed   :  { %2799 = vmatprep.subr.mxu0 %v3030_v8 }
 0x7a2   :  { %v1030_v18 = vpop.f32.mrb[12].mxu0 }
 0x7a3   :  { %v1031_v19 = vadd.f32 %v1030_v18, %v951_v14  ;;  %v1032_v20 = vpop.f32.mrb[13].mxu0 }
 0x7a4   :  { %v1033_v22 = vadd.f32 %v1032_v20, %v955_v17 }
 0x7a5   :  { %v1041_v26 = vmax.f32 %v1031_v19, 0.0 }
 0x7a6   :  { %v1042_v23 = vmax.f32 %v1033_v22, 0.0  ;;  %v1036_v25 = vpop.f32.mrb[14].mxu0 }
 0x7a7   :  { %v1037_v27 = vadd.f32 %v1036_v25, %v951_v14  ;;  %v1038_v28 = vpop.f32.mrb[15].mxu0 }
 0x7a8   :  { %v1039_v29 = vadd.f32 %v1038_v28, %v955_v17  ;;  %1145 = vmatprep.mubr.f32.mxu0 %v1042_v23 }
 0x7a9   :  { %1146 = vmatmul.mubr.f32.vlgmr.msra.gmra.mrb[16].mxu0 %v1041_v26  ;;  %v1043_v32 = vmax.f32 %v1037_v27, 0.0 }
 0x7aa   :  { %v1044_v31 = vmax.f32 %v1039_v29, 0.0 }
 0x7ac   :  { %1150 = vmatprep.mubr.f32.mxu0 %v1044_v31 }
 0x7ad   :  { %1151 = vmatmul.mubr.f32.gmra.mrb[18].mxu0 %v1043_v32 }
 0x7ae   :  { %2801 = vmatprep.mubr.msk.f32.mxu0 %vm3031_vm1, %v3030_v8 }
 0x87c   :  { %v2613_v34 = vpop.f32.mrb[16].mxu0 }
 0x87d   :  { %v2614_v38 = vpop.f32.mrb[17].mxu0 }
 0x87e   :  { %v2615_v39 = vadd.f32 %v2614_v38, %v2613_v34 }
 0x880   :  { %v1148_v40 = vadd.f32 %v2615_v39, %v1080_v35  ;;  %v2616_v42 = vpop.f32.mrb[18].mxu0 }
 0x881   :  { %v2617_v43 = vpop.f32.mrb[19].mxu0 }
 0x882   :  { %v2618_v44 = vadd.f32 %v2617_v43, %v2616_v42  ;;  %v1156_v45 = vadd.f32 %v1148_v40, %v3291_v30 }
 0x884   :  { %v1153_v46 = vadd.f32 %v2618_v44, %v1080_v35  ;;  %v1158_v47 = vsel %vm56_vm0, %v1156_v45, 0.0 }
 0x885   :  { %1159 = vadd.xlane.f32.xlu1 %v1158_v47 }
 0x886   :  { %v1157_v48 = vadd.f32 %v1153_v46, %v3308_v41  ;;  %v2481_v41 = vld [vmem:[%s3711_s1 + $0x20] sm:$0xff]  ;;  %s3006_s1 = scalar_lea.vmem %s2451_s21, 256 }
 0x887   :  { %v2882_v58 = vpack.c.bf16 %v2482_v57, %v2481_v41  ;;  %p3007_p0 = scmp.ne.s32.totalorder %s2451_s21, %s3006_s1  ;;  %p3012_p2 = scmp.lt.s32.totalorder %s3006_s1, %s3006_s1 }
 0x888   :  { %v1161_v49 = vsel %vm56_vm0, %v1157_v48, 0.0 }
 0x889   :  { %1162 = vadd.xlane.f32.xlu0 %v1161_v49  ;;  %2883 = vmatprep.subr.bf16.mxu1 %v2882_v58  ;;  %p3013_p3 = por %p3012_p2, %p3011_p1 }
 0x88a   :  { %2885 = vmatpush3.bf16.msra.mxu1 %v2882_v58 }
 0x88b   :  { %2887 = vmatprep.subr.bf16.mxu1 %v2886_v61  ;;  %p3014_p4 = pnand %p3013_p3, %p3007_p0 }
 0x88e   :  { %2889 = vmatpush3.bf16.msra.mxu1 %v2886_v61 }
 0x88f   :  { %2764 = vmatprep.subr.mxu1 %v3030_v8 }
 0x912   :  { %v1160_v50 = vpop.xlane.xlu1 %1159 }
 0x913   :  { %v1164_v51 = vmul.f32 0.03125, %v1160_v50 }
 0x915   :  { %v1166_v52 = vsub.f32 %v1156_v45, %v1164_v51 }
 0x916   :  { %v1163_v53 = vpop.xlane.xlu0 %1162 }
 0x917   :  { %v1165_v54 = vmul.f32 0.03125, %v1163_v53  ;;  %v1168_v55 = vmul.f32 %v1166_v52, %v1166_v52 }
 0x919   :  { %v1167_v7 = vsub.f32 %v1157_v48, %v1165_v54  ;;  %v1170_v5 = vsel %vm56_vm0, %v1168_v55, 0.0 }
 0x91a   :  { %1171 = vadd.xlane.f32.xlu1 %v1170_v5 }
 0x91b   :  { %v1169_v30 = vmul.f32 %v1167_v7, %v1167_v7 }
 0x91d   :  { %v1173_v56 = vsel %vm56_vm0, %v1169_v30, 0.0 }
 0x91e   :  { %1174 = vadd.xlane.f32.xlu0 %v1173_v56 }
 0x9a7   :  { %v1172_v62 = vpop.xlane.xlu1 %1171 }
 0x9a8   :  { %v1176_v63 = vmul.f32 0.03125, %v1172_v62 }
 0x9aa   :  { %v1178_v0 = vadd.f32 1e-05, %v1176_v63 }
 0x9ab   :  { %v1175_v1 = vpop.xlane.xlu0 %1174 }
 0x9ac   :  { %2978 = vrsqrt.f32 %v1178_v0  ;;  %v1177_v2 = vmul.f32 0.03125, %v1175_v1 }
 0x9ae   :  { %v1179_v3 = vadd.f32 1e-05, %v1177_v2 }
 0x9b0   :  { %2980 = vrsqrt.f32 %v1179_v3 }
 0x9b6   :  { %v2979_v10 = vpop.eup %2978 }
 0x9b7   :  { %v1182_v11 = vmul.f32 %v2979_v10, %v1166_v52 }
 0x9b9   :  { %v1188_v13 = vmul.f32 %v1187_v9, %v1182_v11 }
 0x9ba   :  { %v2981_v14 = vpop.eup %2980 }
 0x9bb   :  { %v1183_v17 = vmul.f32 %v2981_v14, %v1167_v7  ;;  %v3417_v18 = vadd.f32 %v1193_v12, %v1188_v13 }
 0x9bd   :  { %v1189_v19 = vmul.f32 %v1187_v9, %v1183_v17  ;;  %2761 = vmatprep.mubr.msk.f32.mxu1 %vm56_vm0, %v3417_v18 }
 0x9bf   :  { %v3421_v20 = vadd.f32 %v1193_v12, %v1189_v19 }
 0x9c1   :  { %2762 = vmatmul.mubr.msk.f32.vlgmr.msra.gmra.mrb[8].mxu1 %vm56_vm0, %v3421_v20 }
 0x9c2   :  { %2766 = vmatprep.mubr.msk.f32.mxu1 %vm3031_vm1, %v3030_v8 }
 0xa94   :  { %v2763_v22 = vpop.f32.mrb[8].mxu1 }
 0xa95   :  { %v3430_v23 = vadd.f32 %v2763_v22, %v2486_v37  ;;  %v1283_v25 = vpop.f32.mrb[9].mxu1 }
 0xa96   :  { %v1284_v26 = vadd.f32 %v2486_v37, %v1283_v25 }
 0xa98   :  { %1293 = vrot.lane.b32.xlu1 %v1284_v26, %s3033_s27 }
 0xa9c   :  { %1458 = vrot.lane.b32.xlu1 %v1284_v26, %s3034_s28 }
 0xaa0   :  { %1456 = vrot.lane.b32.xlu1 %v1284_v26, %s3032_s0 }
 0xb0a   :  { %v1294_v27 = vpop.permute.xlu1 %1293 }
 0xb0b   :  { %2765 = vmatpush3.xpose.msk.msra.mxu1 %vm141_vm2, %v1294_v27 }
 0xb0c   :  { %2769 = vmatprep.subr.mxu1 %v3030_v8 }
 0xb0e   :  { %2767 = vmatmul.mubr.msk.f32.vlgmr.msra.gmra.mrb[10].mxu1 %vm141_vm2, %v1284_v26  ;;  %v1459_v45 = vpop.permute.xlu1 %1458 }
 0xb0f   :  { %2771 = vmatprep.mubr.msk.f32.mxu1 %vm3031_vm1, %v3030_v8 }
 0xb12   :  { %v1457_v47 = vpop.permute.xlu1 %1456 }
 0xbe1   :  { %v1365_v28 = vpop.f32.mrb[10].mxu1 }
 0xbe2   :  { %v1366_v29 = vadd.f32 %v1365_v28, %v3170_v24  ;;  %v2768_v31 = vpop.f32.mrb[11].mxu1 }
 0xbe4   :  { %v1369_v32 = vsel %vm216_vm4, %v1366_v29, -inf }
 0xbe5   :  { %1370 = vmax.xlane.f32.xlu0 %v1369_v32 }
 0xc72   :  { %v1371_v34 = vpop.xlane.xlu0 %1370 }
 0xc73   :  { %v1372_v35 = vsub.f32 %v1366_v29, %v1371_v34 }
 0xc75   :  { %v1373_v38 = vmul.f32 1.442695, %v1372_v35 }
 0xc77   :  { %2982 = vpow2.f32 %v1373_v38 }
 0xc81   :  { %v2983_v39 = vpop.eup %2982 }
 0xc82   :  { %v1375_v40 = vsel %vm216_vm4, %v2983_v39, 0.0 }
 0xc83   :  { %1376 = vadd.xlane.f32.xlu0 %v1375_v40 }
 0xc99   :  { %1380 = vrot.lane.b32.xlu0 %v1284_v26, %s3036_s29 }
 0xd10   :  { %v1377_v42 = vpop.xlane.xlu0 %1376 }
 0xd11   :  { %2984 = vrcp.f32 %v1377_v42 }
 0xd14   :  { %v1381_v43 = vpop.permute.xlu0 %1380 }
 0xd15   :  { %2770 = vmatpush3.msra.mxu1 %v1381_v43 }
 0xd16   :  { %2774 = vmatprep.subr.mxu1 %v3030_v8 }
 0xd1b   :  { %v2985_v44 = vpop.eup %2984 }
 0xd1c   :  { %v1379_v46 = vmul.f32 %v2985_v44, %v2983_v39 }
 0xd1e   :  { %2772 = vmatmul.mubr.msk.f32.vlgmr.msra.gmra.mrb[12].mxu1 %vm216_vm4, %v1379_v46  ;;  %v2502_v46 = vld [vmem:[%s3713_s3 + $0x28] sm:$0xff] }
 0xd1f   :  { %2775 = vmatpush3.xpose.msk.msra.mxu1 %vm141_vm2, %v1459_v45  ;;  %2776 = vmatprep.mubr.msk.f32.mxu1 %vm3031_vm1, %v3030_v8  ;;  %v2501_v45 = vld [vmem:[%s3713_s3 + $0x20] sm:$0xff] }
 0xd20   :  { %2779 = vmatprep.subr.mxu1 %v3030_v8 }
 0xd22   :  { %2777 = vmatmul.mubr.msk.f32.vlgmr.msra.gmra.mrb[14].mxu1 %vm141_vm2, %v1457_v47  ;;  %v2890_v47 = vpack.c.bf16 %v2502_v46, %v2501_v45  ;;  %v2522_v46 = vld [vmem:[%s3717_s7 + $0x120] sm:$0xff] }
 0xd23   :  { %2781 = vmatprep.mubr.msk.f32.mxu1 %vm3031_vm1, %v3030_v8 }
 0xdf1   :  { %v3453_v48 = vpop.f32.mrb[12].mxu1 }
 0xdf2   :  { %v2773_v49 = vpop.f32.mrb[13].mxu1 }
 0xdf5   :  { %v1530_v50 = vpop.f32.mrb[14].mxu1 }
 0xdf6   :  { %v1531_v51 = vadd.f32 %v1530_v50, %v3170_v24  ;;  %v2778_v52 = vpop.f32.mrb[15].mxu1 }
 0xdf8   :  { %v1534_v53 = vsel %vm216_vm4, %v1531_v51, -inf }
 0xdf9   :  { %1535 = vmax.xlane.f32.xlu1 %v1534_v53 }
 0xe0a   :  { %1545 = vrot.lane.b32.xlu1 %v1284_v26, %s3037_s30 }
 0xe86   :  { %v1536_v54 = vpop.xlane.xlu1 %1535 }
 0xe87   :  { %v1537_v55 = vsub.f32 %v1531_v51, %v1536_v54  ;;  %v3515_v54 = vld [vmem:[%s3714_s4 + $0x8] sm:$0xff] }
 0xe89   :  { %v1538_v7 = vmul.f32 1.442695, %v1537_v55  ;;  %v1968_v55 = vrot.slane %v3515_v54, %v3225_v36 }
 0xe8a   :  { %v1546_v5 = vpop.permute.xlu1 %1545 }
 0xe8b   :  { %2986 = vpow2.f32 %v1538_v7  ;;  %2780 = vmatpush3.msra.mxu1 %v1546_v5 }
 0xe8c   :  { %2784 = vmatprep.subr.mxu1 %v3030_v8 }
 0xe95   :  { %v2987_v30 = vpop.eup %2986 }
 0xe96   :  { %v1540_v56 = vsel %vm216_vm4, %v2987_v30, 0.0 }
 0xe97   :  { %1541 = vadd.xlane.f32.xlu0 %v1540_v56 }
 0xead   :  { %1627 = vrot.lane.b32.xlu0 %v3430_v23, %s3033_s27 }
 0xf24   :  { %v1542_v41 = vpop.xlane.xlu0 %1541 }
 0xf25   :  { %2988 = vrcp.f32 %v1542_v41 }
 0xf28   :  { %v1628_v59 = vpop.permute.xlu0 %1627 }
 0xf2f   :  { %v2989_v57 = vpop.eup %2988 }
 0xf30   :  { %v1544_v58 = vmul.f32 %v2989_v57, %v2987_v30 }
 0xf32   :  { %2782 = vmatmul.mubr.msk.f32.vlgmr.msra.gmra.mrb[16].mxu1 %vm216_vm4, %v1544_v58 }
 0xf33   :  { %2785 = vmatpush3.xpose.msk.msra.mxu1 %vm141_vm2, %v1628_v59  ;;  %2786 = vmatprep.mubr.msk.f32.mxu1 %vm3031_vm1, %v3030_v8 }
 0xf34   :  { %2789 = vmatprep.subr.mxu1 %v3030_v8 }
 0xf36   :  { %2787 = vmatmul.mubr.msk.f32.vlgmr.msra.gmra.mrb[18].mxu1 %vm141_vm2, %v3430_v23 }
 0xf37   :  { %2791 = vmatprep.mubr.msk.f32.mxu1 %vm3031_vm1, %v3030_v8 }
0x1005   :  { %v1617_v60 = vpop.f32.mrb[16].mxu1 }
0x1006   :  { %v2783_v61 = vpop.f32.mrb[17].mxu1 }
0x1009   :  { %v1699_v62 = vpop.f32.mrb[18].mxu1 }
0x100a   :  { %v1700_v63 = vadd.f32 %v1699_v62, %v3170_v24  ;;  %v2788_v0 = vpop.f32.mrb[19].mxu1 }
0x100c   :  { %v1703_v1 = vsel %vm216_vm4, %v1700_v63, -inf }
0x100d   :  { %1704 = vmax.xlane.f32.xlu1 %v1703_v1 }
0x101e   :  { %1714 = vrot.lane.b32.xlu1 %v3430_v23, %s3036_s29 }
0x1022   :  { %1790 = vrot.lane.b32.xlu1 %v3430_v23, %s3032_s0 }
0x109a   :  { %v1705_v2 = vpop.xlane.xlu1 %1704 }
0x109b   :  { %v1706_v3 = vsub.f32 %v1700_v63, %v1705_v2 }
0x109d   :  { %v1707_v9 = vmul.f32 1.442695, %v1706_v3 }
0x109e   :  { %v1715_v10 = vpop.permute.xlu1 %1714 }
0x109f   :  { %2990 = vpow2.f32 %v1707_v9  ;;  %2790 = vmatpush3.msra.mxu1 %v1715_v10  ;;  %v2508_v9 = vld [vmem:[%s3715_s5 + $0x48] sm:$0xff]  ;;  %v2510_v10 = vld [vmem:[%s3715_s5 + $0x58] sm:$0xff] }
0x10a0   :  { %2794 = vmatprep.subr.mxu1 %v3030_v8 }
0x10a2   :  { %v1791_v37 = vpop.permute.xlu1 %1790 }
0x10a9   :  { %v2991_v11 = vpop.eup %2990 }
0x10aa   :  { %v1709_v12 = vsel %vm216_vm4, %v2991_v11, 0.0 }
0x10ab   :  { %1710 = vadd.xlane.f32.xlu0 %v1709_v12  ;;  %v2507_v12 = vld [vmem:[%s3715_s5 + $0x40] sm:$0xff] }
0x10c1   :  { %1792 = vrot.lane.b32.xlu0 %v3430_v23, %s3034_s28 }
0x1138   :  { %v1711_v13 = vpop.xlane.xlu0 %1710 }
0x1139   :  { %2992 = vrcp.f32 %v1711_v13  ;;  %v2509_v13 = vld [vmem:[%s3715_s5 + $0x50] sm:$0xff] }
0x113c   :  { %v1793_v19 = vpop.permute.xlu0 %1792 }
0x1143   :  { %v2993_v14 = vpop.eup %2992 }
0x1144   :  { %v1713_v17 = vmul.f32 %v2993_v14, %v2991_v11  ;;  %v2898_v11 = vpack.c.bf16 %v2510_v10, %v2508_v9  ;;  %v2900_v14 = vpack.c.bf16 %v2509_v13, %v2507_v12  ;;  %v2081_v13 = vrot.slane %v3515_v54, %v3271_v15 }
0x1146   :  { %2792 = vmatmul.mubr.msk.f32.vlgmr.msra.gmra.mrb[20].mxu1 %vm216_vm4, %v1713_v17  ;;  %v2512_v17 = vld [vmem:[%s3715_s5 + $0x68] sm:$0xff] }
0x1147   :  { %2795 = vmatpush3.xpose.msk.msra.mxu1 %vm141_vm2, %v1793_v19  ;;  %2796 = vmatprep.mubr.msk.f32.mxu1 %vm3031_vm1, %v3030_v8  ;;  %v2514_v19 = vld [vmem:[%s3715_s5 + $0x78] sm:$0xff] }
0x1148   :  { %2891 = vmatprep.subr.bf16.mxu1 %v2890_v47 }
0x114a   :  { %2797 = vmatmul.mubr.msk.f32.vlgmr.msra.gmra.mrb[22].mxu1 %vm141_vm2, %v1791_v37  ;;  %v2511_v37 = vld [vmem:[%s3715_s5 + $0x60] sm:$0xff] }
0x114b   :  { %2893 = vmatpush3.bf16.msra.mxu1 %v2890_v47  ;;  %v2540_v47 = vld [vmem:[%s3717_s7 + $0x1b0] sm:$0xff] }
0x1219   :  { %v1786_v22 = vpop.f32.mrb[20].mxu1 }
0x121a   :  { %v2793_v25 = vpop.f32.mrb[21].mxu1 }
0x121b   :  { %v2513_v25 = vld [vmem:[%s3715_s5 + $0x70] sm:$0xff] }
0x121d   :  { %v1864_v26 = vpop.f32.mrb[22].mxu1 }
0x121e   :  { %v1865_v27 = vadd.f32 %v1864_v26, %v3170_v24  ;;  %v2798_v28 = vpop.f32.mrb[23].mxu1  ;;  %v2904_v26 = vpack.c.bf16 %v2513_v25, %v2511_v37 }
0x121f   :  { %v2535_v28 = vld [vmem:[%s3717_s7 + $0x188] sm:$0xff] }
0x1220   :  { %v1868_v29 = vsel %vm216_vm4, %v1865_v27, -inf }
0x1221   :  { %1869 = vmax.xlane.f32.xlu1 %v1868_v29  ;;  %v2518_v29 = vld [vmem:[%s3717_s7 + $0x100] sm:$0xff] }
0x1232   :  { %1622 = vrot.lane.b32.xlu1 %v1617_v60, %s3038_s19 }
0x12ae   :  { %v1870_v31 = vpop.xlane.xlu1 %1869 }
0x12af   :  { %v1871_v32 = vsub.f32 %v1865_v27, %v1870_v31  ;;  %v2534_v27 = vld [vmem:[%s3717_s7 + $0x180] sm:$0xff] }
0x12b0   :  { %v2906_v31 = vpack.c.bf16 %v2535_v28, %v2534_v27 }
0x12b1   :  { %v1872_v34 = vmul.f32 1.442695, %v1871_v32  ;;  %v2519_v32 = vld [vmem:[%s3717_s7 + $0x108] sm:$0xff] }
0x12b2   :  { %v1623_v35 = vpop.permute.xlu1 %1622 }
0x12b3   :  { %2994 = vpow2.f32 %v1872_v34  ;;  %v1625_v38 = vsel %vm141_vm2, %v3453_v48, %v1623_v35  ;;  %v2504_v48 = vld [vmem:[%s3713_s3 + $0x38] sm:$0xff]  ;;  %v2536_v34 = vld [vmem:[%s3717_s7 + $0x190] sm:$0xff] }
0x12b4   :  { %2812 = vmatprep.mubr.msk.f32.mxu1 %vm56_vm0, %v1625_v38  ;;  %v2537_v35 = vld [vmem:[%s3717_s7 + $0x198] sm:$0xff]  ;;  %v2908_v38 = vpack.c.bf16 %v2519_v32, %v2518_v29  ;;  %v2532_v32 = vld [vmem:[%s3717_s7 + $0x170] sm:$0xff] }
0x12bd   :  { %v2995_v39 = vpop.eup %2994 }
0x12be   :  { %v1874_v40 = vsel %vm216_vm4, %v2995_v39, 0.0 }
0x12bf   :  { %1875 = vadd.xlane.f32.xlu0 %v1874_v40  ;;  %v2520_v40 = vld [vmem:[%s3717_s7 + $0x110] sm:$0xff] }
0x12d5   :  { %1879 = vrot.lane.b32.xlu0 %v3430_v23, %s3037_s30  ;;  %v2503_v23 = vld [vmem:[%s3713_s3 + $0x30] sm:$0xff] }
0x12d6   :  { %v2894_v49 = vpack.c.bf16 %v2504_v48, %v2503_v23  ;;  %v2523_v23 = vld [vmem:[%s3717_s7 + $0x128] sm:$0xff]  ;;  %v2541_v48 = vld [vmem:[%s3717_s7 + $0x1b8] sm:$0xff] }
0x12d8   :  { %2895 = vmatprep.subr.bf16.mxu1 %v2894_v49 }
0x12d9   :  { %2897 = vmatpush3.bf16.msra.mxu1 %v2894_v49  ;;  %v2916_v49 = vpack.c.bf16 %v2523_v23, %v2522_v46 }
0x12da   :  { %2907 = vmatprep.subr.bf16.mxu1 %v2906_v31 }
0x134c   :  { %v1876_v24 = vpop.xlane.xlu0 %1875 }
0x134d   :  { %2996 = vrcp.f32 %v1876_v24  ;;  %v2521_v24 = vld [vmem:[%s3717_s7 + $0x118] sm:$0xff] }
0x1350   :  { %v1880_v42 = vpop.permute.xlu0 %1879 }
0x1351   :  { %2800 = vmatpush3.msra.mxu0 %v1880_v42  ;;  %v2538_v42 = vld [vmem:[%s3717_s7 + $0x1a0] sm:$0xff] }
0x1352   :  { %2899 = vmatprep.subr.bf16.mxu0 %v2898_v11 }
0x1357   :  { %v2997_v43 = vpop.eup %2996 }
0x1358   :  { %v1878_v44 = vmul.f32 %v2997_v43, %v2995_v39  ;;  %v2910_v39 = vpack.c.bf16 %v2537_v35, %v2536_v34  ;;  %v2539_v43 = vld [vmem:[%s3717_s7 + $0x1a8] sm:$0xff]  ;;  %v2533_v34 = vld [vmem:[%s3717_s7 + $0x178] sm:$0xff] }
0x1359   :  { %v2914_v45 = vpack.c.bf16 %v2539_v43, %v2538_v42  ;;  %v2936_v35 = vpack.c.bf16 %v2533_v34, %v2532_v32 }
0x135a   :  { %2802 = vmatmul.mubr.msk.f32.vlgmr.msra.gmra.mrb[20].mxu0 %vm216_vm4, %v1878_v44  ;;  %v2912_v44 = vpack.c.bf16 %v2521_v24, %v2520_v40 }
0x135b   :  { %2182 = vmatprep.mubr.f32.mxu0 %v3030_v8  ;;  %2901 = vmatpush1.bf16.msra.mxu0 %v2900_v14 }
0x142d   :  { %v1951_v50 = vpop.f32.mrb[20].mxu0 }
0x142e   :  { %1956 = vrot.lane.b32.xlu1 %v1951_v50, %s3038_s19  ;;  %v2803_v51 = vpop.f32.mrb[21].mxu0  ;;  %v2918_v50 = vpack.c.bf16 %v2541_v48, %v2540_v47 }
0x142f   :  { %v2524_v51 = vld [vmem:[%s3717_s7 + $0x130] sm:$0xff] }
0x14a0   :  { %v1957_v52 = vpop.permute.xlu1 %1956 }
0x14a1   :  { %v1959_v53 = vsel %vm141_vm2, %v1786_v22, %v1957_v52  ;;  %v2902_v22 = vpack.c.bf16 %v2514_v19, %v2512_v17  ;;  %v2525_v52 = vld [vmem:[%s3717_s7 + $0x138] sm:$0xff]  ;;  %v2087_v19 = vrot.slane %v3515_v54, %v934_v16  ;;  %v2531_v16 = vld [vmem:[%s3717_s7 + $0x168] sm:$0xff] }
0x14a2   :  { %2813 = vmatmul.mubr.msk.f32.vlgmr.msra.gmra.mrb[24].mxu1 %vm56_vm0, %v1959_v53  ;;  %v2542_v53 = vld [vmem:[%s3717_s7 + $0x1c0] sm:$0xff] }
0x14a3   :  { %2903 = vmatprep.subr.bf16.mxu0 %v2902_v22  ;;  %2909 = vmatpush3.bf16.msra.mxu1 %v2908_v38  ;;  %v2515_v38 = vld [vmem:[%s3716_s6 + $0x2] sm:$0x3] }
0x14a4   :  { %2905 = vmatpush1.bf16.msra.mxu0 %v2904_v26  ;;  %2911 = vmatprep.subr.bf16.mxu1 %v2910_v39  ;;  %v2105_v39 = vrot.slane %v2515_v38, %v3225_v36  ;;  %v2109_v40 = vrot.slane %v2515_v38, %v3271_v15  ;;  %v2235_v36 = vrot.slane %v3515_v54, %v1079_v33 }
0x14a7   :  { %2913 = vmatpush3.bf16.msra.mxu1 %v2912_v44 }
0x14a8   :  { %2915 = vmatprep.subr.bf16.mxu1 %v2914_v45 }
0x14ab   :  { %2917 = vmatpush3.bf16.msra.mxu1 %v2916_v49 }
0x14ac   :  { %2919 = vmatprep.subr.bf16.mxu1 %v2918_v50 }
0x1575   :  { %v2814_v7 = vpop.f32.mrb[24].mxu1 }
0x1576   :  { %v2047_v5 = vadd.f32 %v2814_v7, %v1968_v55  ;;  %v2041_v30 = vpop.f32.mrb[25].mxu1  ;;  %v2920_v7 = vpack.c.bf16 %v2525_v52, %v2524_v51 }
0x1577   :  { %v2042_v56 = vadd.f32 %v2041_v30, %v1968_v55  ;;  %v2543_v55 = vld [vmem:[%s3717_s7 + $0x1c8] sm:$0xff]  ;;  %v2526_v30 = vld [vmem:[%s3717_s7 + $0x140] sm:$0xff] }
0x1578   :  { %v2051_v41 = vadd.f32 %v2047_v5, %v3421_v20  ;;  %v2922_v5 = vpack.c.bf16 %v2543_v55, %v2542_v53  ;;  %2921 = vmatpush3.bf16.msra.mxu1 %v2920_v7 }
0x1579   :  { %v2050_v57 = vadd.f32 %v2042_v56, %v3417_v18  ;;  %v2527_v56 = vld [vmem:[%s3717_s7 + $0x148] sm:$0xff] }
0x157a   :  { %v2055_v58 = vsel %vm56_vm0, %v2051_v41, 0.0  ;;  %2923 = vmatprep.subr.bf16.mxu1 %v2922_v5 }
0x157b   :  { %2056 = vadd.xlane.f32.xlu1 %v2055_v58  ;;  %v2052_v59 = vsel %vm56_vm0, %v2050_v57, 0.0  ;;  %v2924_v58 = vpack.c.bf16 %v2527_v56, %v2526_v30 }
0x157c   :  { %2053 = vadd.xlane.f32.xlu0 %v2052_v59 }
0x157d   :  { %2925 = vmatpush3.bf16.msra.mxu1 %v2924_v58 }
0x1608   :  { %v2057_v60 = vpop.xlane.xlu1 %2056 }
0x1609   :  { %v2059_v61 = vmul.f32 0.03125, %v2057_v60  ;;  %v2054_v62 = vpop.xlane.xlu0 %2053  ;;  %v2528_v60 = vld [vmem:[%s3717_s7 + $0x150] sm:$0xff] }
0x160a   :  { %v2058_v63 = vmul.f32 0.03125, %v2054_v62  ;;  %v2546_v62 = vld [vmem:[%s3717_s7 + $0x1e0] sm:$0xff] }
0x160b   :  { %v3523_v0 = vsub.f32 %v2051_v41, %v2059_v61  ;;  %v2544_v41 = vld [vmem:[%s3717_s7 + $0x1d0] sm:$0xff]  ;;  %v2529_v61 = vld [vmem:[%s3717_s7 + $0x158] sm:$0xff] }
0x160c   :  { %v3525_v1 = vsub.f32 %v2050_v57, %v2058_v63  ;;  %v2545_v57 = vld [vmem:[%s3717_s7 + $0x1d8] sm:$0xff]  ;;  %v2547_v63 = vld [vmem:[%s3717_s7 + $0x1e8] sm:$0xff] }
0x160d   :  { %v2063_v18 = vmul.f32 %v3523_v0, %v3523_v0  ;;  %v2926_v59 = vpack.c.bf16 %v2545_v57, %v2544_v41 }
0x160e   :  { %v2062_v2 = vmul.f32 %v3525_v1, %v3525_v1 }
0x160f   :  { %v2067_v3 = vsel %vm56_vm0, %v2063_v18, 0.0  ;;  %2927 = vmatprep.subr.bf16.mxu1 %v2926_v59 }
0x1610   :  { %v2064_v20 = vsel %vm56_vm0, %v2062_v2, 0.0  ;;  %v2928_v2 = vpack.c.bf16 %v2529_v61, %v2528_v60 }
0x1611   :  { %2065 = vadd.xlane.f32.xlu0 %v2064_v20  ;;  %v2930_v20 = vpack.c.bf16 %v2547_v63, %v2546_v62 }
0x1612   :  { %2929 = vmatpush3.bf16.msra.mxu1 %v2928_v2 }
0x1613   :  { %2931 = vmatprep.subr.bf16.mxu1 %v2930_v20 }
0x1615   :  { %2068 = vadd.xlane.f32.xlu0 %v2067_v3 }
0x169e   :  { %v2066_v18 = vpop.xlane.xlu0 %2065 }
0x169f   :  { %v2070_v3 = vmul.f32 0.03125, %v2066_v18 }
0x16a1   :  { %v2072_v9 = vadd.f32 1e-05, %v2070_v3 }
0x16a2   :  { %v2069_v10 = vpop.xlane.xlu0 %2068 }
0x16a3   :  { %2998 = vrsqrt.f32 %v2072_v9  ;;  %v2071_v11 = vmul.f32 0.03125, %v2069_v10  ;;  %v2351_v10 = vld [vmem:[%s3718_s8] sm:$0xff] }
0x16a5   :  { %v2073_v12 = vadd.f32 1e-05, %v2071_v11  ;;  %v2352_v11 = vld [vmem:[%s3718_s8 + $0x8] sm:$0xff] }
0x16a7   :  { %3000 = vrsqrt.f32 %v2073_v12  ;;  %v2938_v12 = vpack.c.bf16 %v2352_v11, %v2351_v10 }
0x16a9   :  { %2939 = vmatprep.subr.bf16.mxu0 %v2938_v12 }
0x16ad   :  { %v2999_v14 = vpop.eup %2998 }
0x16ae   :  { %v2076_v17 = vmul.f32 %v2999_v14, %v3525_v1  ;;  %v2530_v1 = vld [vmem:[%s3717_s7 + $0x160] sm:$0xff]  ;;  %v2354_v14 = vld [vmem:[%s3718_s8 + $0x18] sm:$0xff] }
0x16af   :  { %v2932_v29 = vpack.c.bf16 %v2531_v16, %v2530_v1 }
0x16b0   :  { %v2082_v37 = vmul.f32 %v2081_v13, %v2076_v17 }
0x16b1   :  { %v3001_v22 = vpop.eup %3000  ;;  %2933 = vmatpush3.bf16.msra.mxu1 %v2932_v29  ;;  %v2348_v29 = vrot.slane %v3515_v54, %v1192_v6 }
0x16b2   :  { %v2088_v25 = vadd.f32 %v2087_v19, %v2082_v37  ;;  %v2077_v26 = vmul.f32 %v3001_v22, %v3523_v0  ;;  %v2548_v0 = vld [vmem:[%s3717_s7 + $0x1f0] sm:$0xff] }
0x16b4   :  { %2516 = vmatmul.mubr.msk.f32.vlgmr.msra.gmra.mrb[22].mxu0 %vm56_vm0, %v2088_v25  ;;  %v2083_v27 = vmul.f32 %v2081_v13, %v2077_v26  ;;  %v2353_v13 = vld [vmem:[%s3718_s8 + $0x10] sm:$0xff] }
0x16b5   :  { %2188 = vmatprep.mubr.f32.mxu0 %v3030_v8  ;;  %v2549_v8 = vld [vmem:[%s3717_s7 + $0x1f8] sm:$0xff]  ;;  %2941 = vmatpush3.bf16.msra.mxu0 %v2938_v12  ;;  %v2942_v17 = vpack.c.bf16 %v2354_v14, %v2353_v13 }
0x16b6   :  { %v2089_v28 = vadd.f32 %v2087_v19, %v2083_v27  ;;  %v2934_v31 = vpack.c.bf16 %v2549_v8, %v2548_v0 }
0x16b7   :  { %2943 = vmatprep.subr.bf16.mxu0 %v2942_v17 }
0x16b8   :  { %2517 = vmatmul.mubr.msk.f32.gmra.mrb[24].mxu0 %vm56_vm0, %v2089_v28  ;;  %2935 = vmatprep.subr.bf16.mxu1 %v2934_v31 }
0x16b9   :  { %2937 = vmatpush3.bf16.msra.mxu1 %v2936_v35  ;;  %2945 = vmatpush3.bf16.msra.mxu0 %v2942_v17 }
0x1787   :  { %v2184_v24 = vpop.f32.mrb[22].mxu0 }
0x1788   :  { %v2185_v42 = vadd.f32 %v2184_v24, %v2105_v39  ;;  %v2186_v43 = vpop.f32.mrb[23].mxu0 }
0x1789   :  { %v2187_v44 = vadd.f32 %v2186_v43, %v2109_v40 }
0x178a   :  { %v2195_v23 = vmax.f32 %v2185_v42, 0.0 }
0x178b   :  { %v2196_v45 = vmax.f32 %v2187_v44, 0.0  ;;  %v2190_v46 = vpop.f32.mrb[24].mxu0 }
0x178c   :  { %v2191_v47 = vadd.f32 %v2190_v46, %v2105_v39  ;;  %v2192_v48 = vpop.f32.mrb[25].mxu0 }
0x178d   :  { %v2193_v49 = vadd.f32 %v2192_v48, %v2109_v40  ;;  %2300 = vmatprep.mubr.f32.mxu1 %v2196_v45 }
0x178e   :  { %2301 = vmatmul.mubr.f32.vlgmr.msra.gmra.mrb[26].mxu1 %v2195_v23  ;;  %v2197_v51 = vmax.f32 %v2191_v47, 0.0 }
0x178f   :  { %v2198_v50 = vmax.f32 %v2193_v49, 0.0 }
0x1791   :  { %2305 = vmatprep.mubr.f32.mxu1 %v2198_v50 }
0x1792   :  { %2306 = vmatmul.mubr.f32.gmra.mrb[28].mxu1 %v2197_v51 }
0x1861   :  { %v2679_v52 = vpop.f32.mrb[26].mxu1 }
0x1862   :  { %v2680_v15 = vpop.f32.mrb[27].mxu1 }
0x1863   :  { %v2681_v53 = vadd.f32 %v2680_v15, %v2679_v52 }
0x1865   :  { %v2303_v55 = vadd.f32 %v2681_v53, %v2235_v36  ;;  %v2682_v7 = vpop.f32.mrb[28].mxu1 }
0x1866   :  { %v2683_v5 = vpop.f32.mrb[29].mxu1 }
0x1867   :  { %v2684_v30 = vadd.f32 %v2683_v5, %v2682_v7  ;;  %v2311_v56 = vadd.f32 %v2303_v55, %v2088_v25 }
0x1869   :  { %v2308_v41 = vadd.f32 %v2684_v30, %v2235_v36  ;;  %v2313_v57 = vsel %vm56_vm0, %v2311_v56, 0.0 }
0x186a   :  { %2314 = vadd.xlane.f32.xlu1 %v2313_v57 }
0x186b   :  { %v2312_v58 = vadd.f32 %v2308_v41, %v2089_v28  ;;  %v2342_v28 = vrot.slane %v3515_v54, %v1186_v4  ;;  %v2550_v4 = vld [vmem:[%s3719_s9] ss:$0 sm:$0xff] }
0x186d   :  { %v2316_v59 = vsel %vm56_vm0, %v2312_v58, 0.0 }
0x186e   :  { %2317 = vadd.xlane.f32.xlu0 %v2316_v59 }
0x18f7   :  { %v2315_v60 = vpop.xlane.xlu1 %2314 }
0x18f8   :  { %v2319_v61 = vmul.f32 0.03125, %v2315_v60 }
0x18fa   :  { %v2321_v62 = vsub.f32 %v2311_v56, %v2319_v61 }
0x18fb   :  { %v2318_v63 = vpop.xlane.xlu0 %2317 }
0x18fc   :  { %v2320_v33 = vmul.f32 0.03125, %v2318_v63  ;;  %v2323_v2 = vmul.f32 %v2321_v62, %v2321_v62 }
0x18fe   :  { %v2322_v20 = vsub.f32 %v2312_v58, %v2320_v33  ;;  %v2325_v18 = vsel %vm56_vm0, %v2323_v2, 0.0 }
0x18ff   :  { %2326 = vadd.xlane.f32.xlu1 %v2325_v18 }
0x1900   :  { %v2324_v3 = vmul.f32 %v2322_v20, %v2322_v20 }
0x1902   :  { %v2328_v9 = vsel %vm56_vm0, %v2324_v3, 0.0 }
0x1903   :  { %2329 = vadd.xlane.f32.xlu0 %v2328_v9 }
0x198c   :  { %v2327_v19 = vpop.xlane.xlu1 %2326 }
0x198d   :  { %v2331_v37 = vmul.f32 0.03125, %v2327_v19 }
0x198f   :  { %v2333_v22 = vadd.f32 1e-05, %v2331_v37 }
0x1990   :  { %v2330_v25 = vpop.xlane.xlu0 %2329 }
0x1991   :  { %3002 = vrsqrt.f32 %v2333_v22  ;;  %v2332_v26 = vmul.f32 0.03125, %v2330_v25 }
0x1993   :  { %v2334_v27 = vadd.f32 1e-05, %v2332_v26 }
0x1995   :  { %3004 = vrsqrt.f32 %v2334_v27 }
0x199b   :  { %v3003_v1 = vpop.eup %3002 }
0x199c   :  { %v2337_v16 = vmul.f32 %v3003_v1, %v2321_v62 }
0x199e   :  { %v2343_v0 = vmul.f32 %v2342_v28, %v2337_v16 }
0x199f   :  { %v3005_v8 = vpop.eup %3004 }
0x19a0   :  { %v2338_v31 = vmul.f32 %v3005_v8, %v2322_v20  ;;  %v2349_v32 = vadd.f32 %v2348_v29, %v2343_v0 }
0x19a2   :  { %v2344_v34 = vmul.f32 %v2342_v28, %v2338_v31  ;;  %2823 = vmatprep.mubr.msk.f32.mxu0 %vm56_vm0, %v2349_v32 }
0x19a4   :  { %v2350_v35 = vadd.f32 %v2348_v29, %v2344_v34 }
0x19a6   :  { %2824 = vmatmul.mubr.msk.f32.vlgmr.msra.gmra.mrb[26].mxu0 %vm56_vm0, %v2350_v35 }
0x1a79   :  { %v2825_v38 = vpop.f32.mrb[26].mxu0 }
0x1a7a   :  { %v2440_v21 = vadd.f32 %v2825_v38, %v2550_v4  ;;  %v2434_v39 = vpop.f32.mrb[27].mxu0 }
0x1a7b   :  { %v2435_v6 = vadd.f32 %v2550_v4, %v2434_v39 }
0x1a7c   :  { %2444 = vst [vmem:[#allocation2 + $0x8] sm:$0xff] %v2440_v21 }
0x1a7d   :  { %2443 = vst [vmem:[#allocation2] sm:$0xff] %v2435_v6 }
0x1a7e   :  { %3017 = shalt.err (!%p3014_p4)
}
0x1a7f   :  { %s3018_s9 = scalar_lea.hbm %s3720_s10, 256 }
0x1a80   :  { %p3019_p5 = scmp.ne.s32.totalorder %s3720_s10, %s3018_s9  ;;  %p3022_p6 = scmp.lt.u32.totalorder %s3018_s9, %s3720_s10 }
0x1a82   :  { %p3024_p7 = pnand %p3022_p6, %p3019_p5 }
0x1a84   :  { %3027 = shalt.err (!%p3024_p7)
}
0x1a85   :  { %s3040_s30 = smov 128   ;;  %s3041_s23 = smov 8  }
0x1a86   :  { %2456 = dma.vmem_to_hbm [thread:$0]  %s2451_s21, 256, %s3720_s10, [#allocation3], %s3040_s30, %s3040_s30, %s3041_s23  }
0x1a87   :  { %3028 = dma.done.wait [#allocation3], 256  }
0x1a88   :  { %3029 = vsyncadd [#allocation3], 4294967040 }
0x1a89   :  { %2460 = vsyncpa [#allocation3], 1 }

</bundles_post_ra>
